<compile_context>
chip_gen: v7x
topology: tpu7x:2x2x1
jax: 0.10.0
libtpu: 0.0.40
codegen_flags: <defaults>
</compile_context>

<pallas_src>
import functools

import jax
import jax.numpy as jnp
from jax.experimental import pallas as pl
from jax.experimental.pallas import tpu as pltpu

KSIZE = 7
PAD = 3


def _round_up(v, m):
    return ((v + m - 1) // m) * m


def _vmem_budget():
    """(target bytes per input block, vmem_limit cap) for this chip generation."""
    try:
        cap = int(getattr(pltpu.get_tpu_info(), "vmem_capacity_bytes", 64 << 20))
    except Exception:
        cap = 64 << 20                      # conservative fallback
    if cap >= (100 << 20):                  # v5e / v6e class: 128 MiB physical VMEM
        return 8 << 20, 80 << 20
    return 4 << 20, 48 << 20                # v7x class: 64 MiB physical VMEM


def _pick_channel_block(C, HW, itemsize, target_bytes):
    """Largest legal channel tile whose (8,128)-tiling-PADDED block fits target_bytes.

    Legal = CB == C (full dim) or CB % 8 == 0 (BlockSpec sublane rule); CB must
    also divide C exactly so the channel-max reduction sees every channel.
    """
    hw_pad = _round_up(HW, 128)

    def padded_bytes(cb):
        return _round_up(cb, 8) * hw_pad * itemsize

    if padded_bytes(C) <= target_bytes:
        return C
    best = None
    for cb in range(8, C, 8):
        if C % cb == 0 and padded_bytes(cb) <= target_bytes:
            best = cb
    if best is None:
        best = 8 if C % 8 == 0 else C
    return best


def _spatial_attention_kernel(w_ref, x_ref, o_ref,
                              mflat_ref, mm2d_ref, roll_ref, acc_ref,
                              *, H, W, Wo, RS):
    # w_ref    : (49,) f32 SMEM   -- flattened 7x7 conv weight
    # x_ref    : (CB, H*W) VMEM   -- lane-dense channel tile of one image
    # o_ref    : (H, Wo) VMEM     -- lane-dense output slab (Wo = ceil(W/128)*128)
    # mflat_ref: (1, H*W) f32     -- running channel-max, flat / lane-dense
    # mm2d_ref : (Ha, Wa) f32     -- zero-haloed 2-D max map (cold path only)
    # roll_ref : (Ha, Wa) f32     -- single lane-rolled copy (one kj at a time)
    # acc_ref  : (Hs, Wa) f32     -- conv accumulator
    c = pl.program_id(1)
    last_c = pl.num_programs(1) - 1
    _, Wa = mm2d_ref.shape

    # ---- hot path: channel max on the flat, lane-dense block ----------------
    # Reduce in native dtype; cast only the (1, H*W) result to f32.
    blk_max = jnp.max(x_ref[...], axis=0, keepdims=True).astype(jnp.float32)

    @pl.when(c == 0)
    def _init():
        mflat_ref[...] = blk_max            # seed with first tile (NOT max(0, .))

    @pl.when(c != 0)
    def _accum():
        mflat_ref[...] = jnp.maximum(mflat_ref[...], blk_max)

    # ---- cold path (once per image): unflatten + 7x7 conv + sigmoid ---------
    @pl.when(c == last_c)
    def _conv():
        # Zeroing the whole scratch IS the conv's zero padding of max_out.
        mm2d_ref[...] = jnp.zeros_like(mm2d_ref)
        # Unflatten the max map into the interior: rows [PAD, PAD+H), cols [0, W).
        for i in range(H):                                   # static slices
            mm2d_ref[pl.ds(PAD + i, 1), pl.ds(0, W)] = (
                mflat_ref[pl.ds(0, 1), pl.ds(i * W, W)])

        # 7 lane shifts (XLU), one at a time through a single roll buffer.
        # Wrapped columns land in the zero tail (Wa >= W + 2*PAD), reproducing
        # the column zero-halo exactly; contaminated columns are >= W and get
        # sliced off by the wrapper.
        for kj in range(KSIZE):
            s = (PAD - kj) % Wa
            if s == 0:
                src = mm2d_ref
            else:
                roll_ref[...] = pltpu.roll(mm2d_ref[...], shift=s, axis=1)
                src = roll_ref
            w_kj = [w_ref[ki * KSIZE + kj] for ki in range(KSIZE)]

            # Strip-mined accumulation: the strip's partial sum stays in vregs
            # across the 7 ki taps (sublane-offset ref loads = address math)
            # and is stored once per kj.
            for r0 in range(0, H, RS):
                rs = min(RS, H - r0)
                if kj == 0:
                    part = jnp.zeros((rs, Wa), jnp.float32)
                else:
                    part = acc_ref[pl.ds(r0, rs), :]
                for ki in range(KSIZE):
                    part = part + src[pl.ds(r0 + ki, rs), :] * w_kj[ki]
                acc_ref[pl.ds(r0, rs), :] = part

        # Lane-dense store; columns >= W are discarded by the wrapper.
        o_ref[...] = jax.nn.sigmoid(
            acc_ref[pl.ds(0, H), pl.ds(0, Wo)]).astype(o_ref.dtype)


def spatial_attention(x, weight):
    """x: (N, C, H, W) NCHW; weight: (1, 1, 7, 7) conv weight (no bias)."""
    N, C, H, W = x.shape
    HW = H * W
    Wo = _round_up(W, 128)              # lane-dense output slab width
    Ha = _round_up(H + 2 * PAD, 8)      # 2-D max-map rows (sublane aligned)
    Wa = _round_up(W + 2 * PAD, 128)    # 2-D max-map cols (lane aligned)
    Hs = _round_up(H, 8)                # conv accumulator rows
    RS = H if H <= 32 else 32           # conv row-strip size
    # Zero-halo invariants (roll wrap must land in the zero tail).
    assert Wa >= W + 2 * PAD and Ha >= H + 2 * PAD

    target_blk, vmem_cap = _vmem_budget()
    itemsize = jnp.dtype(x.dtype).itemsize
    CB = _pick_channel_block(C, HW, itemsize, target_blk)
    assert C % CB == 0
    n_ct = C // CB

    # Tiling-padded VMEM footprint: double-buffered in/out blocks + scratches.
    hw_pad = _round_up(HW, 128)
    vmem_need = (2 * _round_up(CB, 8) * hw_pad * itemsize        # input blocks
                 + 2 * Hs * Wo * itemsize                        # output blocks
                 + (8 * hw_pad + 2 * Ha * Wa + Hs * Wa) * 4      # scratches
                 + (2 << 20))                                    # Mosaic headroom
    vmem_limit = int(min(vmem_cap, max(vmem_need, 32 << 20)))

    w_flat = weight.reshape(KSIZE * KSIZE).astype(jnp.float32)
    x_flat = x.reshape(N, C, HW)        # free: memory is already contiguous

    kernel = functools.partial(_spatial_attention_kernel, H=H, W=W, Wo=Wo, RS=RS)

    out_pad = pl.pallas_call(
        kernel,
        out_shape=jax.ShapeDtypeStruct((N, H, Wo), x.dtype),
        grid=(N, n_ct),
        in_specs=[
            # flat 7x7 weight table in scalar memory (whole array each step)
            pl.BlockSpec(memory_space=pltpu.MemorySpace.SMEM),
            # one lane-dense (CB, H*W) channel tile of one image per grid step
            pl.BlockSpec((None, CB, HW), lambda n, c: (n, c, 0)),
        ],
        out_specs=pl.BlockSpec((None, H, Wo), lambda n, c: (n, 0, 0)),
        scratch_shapes=[
            pltpu.VMEM((1, HW), jnp.float32),     # running channel-max (flat)
            pltpu.VMEM((Ha, Wa), jnp.float32),    # zero-haloed 2-D max map
            pltpu.VMEM((Ha, Wa), jnp.float32),    # single lane-rolled copy
            pltpu.VMEM((Hs, Wa), jnp.float32),    # conv accumulator
        ],
        compiler_params=pltpu.CompilerParams(
            # batch axis parallel (megacore); channel axis is the reduction
            dimension_semantics=("parallel", "arbitrary"),
            vmem_limit_bytes=vmem_limit,
        ),
    )(w_flat, x_flat)

    # Slice the lane-dense slab back to (N, 1, H, W).
    return out_pad[:, None, :, :W]


def _reference(x, weight):
    """Pure-JAX reference of the PyTorch forward pass (for verification)."""
    max_out = jnp.max(x, axis=1, keepdims=True)                    # (N,1,H,W)
    y = jax.lax.conv_general_dilated(
        max_out, weight,
        window_strides=(1, 1),
        padding=((PAD, PAD), (PAD, PAD)),
        dimension_numbers=("NCHW", "OIHW", "NCHW"),
    )
    return jax.nn.sigmoid(y)


if __name__ == "__main__":
    key = jax.random.PRNGKey(0)
    kx, kw = jax.random.split(key)

    # input: (batch=2, channels=4, H=16, W=16), NCHW like PyTorch
    x = jax.random.normal(kx, (2, 4, 16, 16), dtype=jnp.float32)

    # Conv2d(1, 1, kernel_size=7, bias=False) weight, deterministic init:
    # PyTorch default kaiming-uniform bound = 1/sqrt(fan_in) = 1/7
    bound = 1.0 / 7.0
    weight = jax.random.uniform(
        kw, (1, 1, KSIZE, KSIZE), minval=-bound, maxval=bound, dtype=jnp.float32)

    out = jax.block_until_ready(spatial_attention(x, weight))
    ref = jax.block_until_ready(_reference(x, weight))

    assert out.shape == (2, 1, 16, 16)
    assert jnp.allclose(out, ref, atol=1e-5, rtol=1e-5), (
        f"mismatch: max abs err {jnp.max(jnp.abs(out - ref))}")

    print("KERNEL_OK")
</pallas_src>

<mosaic_0001>
module attributes {stable_mosaic.version = 11 : i64} {
  func.func @_spatial_attention_kernel(%arg0: i32, %arg1: i32, %arg2: memref<49xf32, #tpu.memory_space<smem>>, %arg3: memref<1x4x256xf32, #tpu.memory_space<vmem>>, %arg4: memref<1x16x128xf32, #tpu.memory_space<vmem>>, %arg5: memref<1x256xf32, #tpu.memory_space<vmem>>, %arg6: memref<24x128xf32, #tpu.memory_space<vmem>>, %arg7: memref<24x128xf32, #tpu.memory_space<vmem>>, %arg8: memref<16x128xf32, #tpu.memory_space<vmem>>) attributes {dimension_semantics = [#tpu.dimension_semantics<parallel>, #tpu.dimension_semantics<arbitrary>], iteration_bounds = array<i64: 2, 1>, scalar_prefetch = 0 : i64, scratch_operands = 4 : i64, tpu.core_type = #tpu.core_type<tc>, window_params = [{transform_indices = @transform_0, window_bounds = array<i64: 49>}, {transform_indices = @transform_1, window_bounds = array<i64: 1, 4, 256>}, {transform_indices = @transform_2, window_bounds = array<i64: 1, 16, 128>}]} {
    %c0 = arith.constant 0 : index
    %c0_0 = arith.constant 0 : index
    %c0_1 = arith.constant 0 : index
    %0 = vector.load %arg3[%c0, %c0_0, %c0_1] : memref<1x4x256xf32, #tpu.memory_space<vmem>>, vector<1x4x256xf32>
    %1 = vector.shape_cast %0 : vector<1x4x256xf32> to vector<4x256xf32>
    %cst = arith.constant dense<0xFF800000> : vector<256xf32>
    %2 = vector.multi_reduction <maximumf>, %1, %cst [0] : vector<4x256xf32> to vector<256xf32>
    %3 = vector.shape_cast %2 : vector<256xf32> to vector<1x256xf32>
    %c0_i32 = arith.constant 0 : i32
    %4 = arith.cmpi eq, %arg1, %c0_i32 : i32
    %5 = arith.extui %4 : i1 to i32
    %c0_i32_2 = arith.constant 0 : i32
    %6 = arith.cmpi ne, %5, %c0_i32_2 : i32
    scf.if %6 {
      %c0_7 = arith.constant 0 : index
      %c0_8 = arith.constant 0 : index
      %13 = vector.load %arg5[%c0_7, %c0_8] : memref<1x256xf32, #tpu.memory_space<vmem>>, vector<1x256xf32>
      tpu.vector_store %arg5[%c0_7, %c0_8], %3 {strides = array<i32>} : memref<1x256xf32, #tpu.memory_space<vmem>>, vector<1x256xf32>,
    } else {
    }
    %c0_i32_3 = arith.constant 0 : i32
    %7 = arith.cmpi ne, %arg1, %c0_i32_3 : i32
    %8 = arith.extui %7 : i1 to i32
    %c0_i32_4 = arith.constant 0 : i32
    %9 = arith.cmpi ne, %8, %c0_i32_4 : i32
    scf.if %9 {
      %c0_7 = arith.constant 0 : index
      %c0_8 = arith.constant 0 : index
      %13 = vector.load %arg5[%c0_7, %c0_8] : memref<1x256xf32, #tpu.memory_space<vmem>>, vector<1x256xf32>
      %14 = arith.maximumf %13, %3 : vector<1x256xf32>
      %c0_9 = arith.constant 0 : index
      %c0_10 = arith.constant 0 : index
      %15 = vector.load %arg5[%c0_9, %c0_10] : memref<1x256xf32, #tpu.memory_space<vmem>>, vector<1x256xf32>
      tpu.vector_store %arg5[%c0_9, %c0_10], %14 {strides = array<i32>} : memref<1x256xf32, #tpu.memory_space<vmem>>, vector<1x256xf32>,
    } else {
    }
    %c0_i32_5 = arith.constant 0 : i32
    %10 = arith.cmpi eq, %arg1, %c0_i32_5 : i32
    %11 = arith.extui %10 : i1 to i32
    %c0_i32_6 = arith.constant 0 : i32
    %12 = arith.cmpi ne, %11, %c0_i32_6 : i32
    scf.if %12 {
      %cst_7 = arith.constant 0.000000e+00 : f32
      %13 = vector.broadcast %cst_7 : f32 to vector<24x128xf32>
      %c0_8 = arith.constant 0 : index
      %c0_9 = arith.constant 0 : index
      %14 = vector.load %arg6[%c0_8, %c0_9] : memref<24x128xf32, #tpu.memory_space<vmem>>, vector<24x128xf32>
      tpu.vector_store %arg6[%c0_8, %c0_9], %13 {strides = array<i32>} : memref<24x128xf32, #tpu.memory_space<vmem>>, vector<24x128xf32>,
      %c0_10 = arith.constant 0 : index
      %c0_11 = arith.constant 0 : index
      %15 = vector.load %arg5[%c0_10, %c0_11] : memref<1x256xf32, #tpu.memory_space<vmem>>, vector<1x16xf32>
      %c3 = arith.constant 3 : index
      %c0_12 = arith.constant 0 : index
      %16 = vector.load %arg6[%c3, %c0_12] : memref<24x128xf32, #tpu.memory_space<vmem>>, vector<1x16xf32>
      tpu.vector_store %arg6[%c3, %c0_12], %15 {strides = array<i32>} : memref<24x128xf32, #tpu.memory_space<vmem>>, vector<1x16xf32>,
      %c0_13 = arith.constant 0 : index
      %c16 = arith.constant 16 : index
      %17 = vector.load %arg5[%c0_13, %c16] : memref<1x256xf32, #tpu.memory_space<vmem>>, vector<1x16xf32>
      %c4 = arith.constant 4 : index
      %c0_14 = arith.constant 0 : index
      %18 = vector.load %arg6[%c4, %c0_14] : memref<24x128xf32, #tpu.memory_space<vmem>>, vector<1x16xf32>
      tpu.vector_store %arg6[%c4, %c0_14], %17 {strides = array<i32>} : memref<24x128xf32, #tpu.memory_space<vmem>>, vector<1x16xf32>,
      %c0_15 = arith.constant 0 : index
      %c32 = arith.constant 32 : index
      %19 = vector.load %arg5[%c0_15, %c32] : memref<1x256xf32, #tpu.memory_space<vmem>>, vector<1x16xf32>
      %c5 = arith.constant 5 : index
      %c0_16 = arith.constant 0 : index
      %20 = vector.load %arg6[%c5, %c0_16] : memref<24x128xf32, #tpu.memory_space<vmem>>, vector<1x16xf32>
      tpu.vector_store %arg6[%c5, %c0_16], %19 {strides = array<i32>} : memref<24x128xf32, #tpu.memory_space<vmem>>, vector<1x16xf32>,
      %c0_17 = arith.constant 0 : index
      %c48 = arith.constant 48 : index
      %21 = vector.load %arg5[%c0_17, %c48] : memref<1x256xf32, #tpu.memory_space<vmem>>, vector<1x16xf32>
      %c6 = arith.constant 6 : index
      %c0_18 = arith.constant 0 : index
      %22 = vector.load %arg6[%c6, %c0_18] : memref<24x128xf32, #tpu.memory_space<vmem>>, vector<1x16xf32>
      tpu.vector_store %arg6[%c6, %c0_18], %21 {strides = array<i32>} : memref<24x128xf32, #tpu.memory_space<vmem>>, vector<1x16xf32>,
      %c0_19 = arith.constant 0 : index
      %c64 = arith.constant 64 : index
      %23 = vector.load %arg5[%c0_19, %c64] : memref<1x256xf32, #tpu.memory_space<vmem>>, vector<1x16xf32>
      %c7 = arith.constant 7 : index
      %c0_20 = arith.constant 0 : index
      %24 = vector.load %arg6[%c7, %c0_20] : memref<24x128xf32, #tpu.memory_space<vmem>>, vector<1x16xf32>
      tpu.vector_store %arg6[%c7, %c0_20], %23 {strides = array<i32>} : memref<24x128xf32, #tpu.memory_space<vmem>>, vector<1x16xf32>,
      %c0_21 = arith.constant 0 : index
      %c80 = arith.constant 80 : index
      %25 = vector.load %arg5[%c0_21, %c80] : memref<1x256xf32, #tpu.memory_space<vmem>>, vector<1x16xf32>
      %c8 = arith.constant 8 : index
      %c0_22 = arith.constant 0 : index
      %26 = vector.load %arg6[%c8, %c0_22] : memref<24x128xf32, #tpu.memory_space<vmem>>, vector<1x16xf32>
      tpu.vector_store %arg6[%c8, %c0_22], %25 {strides = array<i32>} : memref<24x128xf32, #tpu.memory_space<vmem>>, vector<1x16xf32>,
      %c0_23 = arith.constant 0 : index
      %c96 = arith.constant 96 : index
      %27 = vector.load %arg5[%c0_23, %c96] : memref<1x256xf32, #tpu.memory_space<vmem>>, vector<1x16xf32>
      %c9 = arith.constant 9 : index
      %c0_24 = arith.constant 0 : index
      %28 = vector.load %arg6[%c9, %c0_24] : memref<24x128xf32, #tpu.memory_space<vmem>>, vector<1x16xf32>
      tpu.vector_store %arg6[%c9, %c0_24], %27 {strides = array<i32>} : memref<24x128xf32, #tpu.memory_space<vmem>>, vector<1x16xf32>,
      %c0_25 = arith.constant 0 : index
      %c112 = arith.constant 112 : index
      %29 = vector.load %arg5[%c0_25, %c112] : memref<1x256xf32, #tpu.memory_space<vmem>>, vector<1x16xf32>
      %c10 = arith.constant 10 : index
      %c0_26 = arith.constant 0 : index
      %30 = vector.load %arg6[%c10, %c0_26] : memref<24x128xf32, #tpu.memory_space<vmem>>, vector<1x16xf32>
      tpu.vector_store %arg6[%c10, %c0_26], %29 {strides = array<i32>} : memref<24x128xf32, #tpu.memory_space<vmem>>, vector<1x16xf32>,
      %c0_27 = arith.constant 0 : index
      %c128 = arith.constant 128 : index
      %31 = vector.load %arg5[%c0_27, %c128] : memref<1x256xf32, #tpu.memory_space<vmem>>, vector<1x16xf32>
      %c11 = arith.constant 11 : index
      %c0_28 = arith.constant 0 : index
      %32 = vector.load %arg6[%c11, %c0_28] : memref<24x128xf32, #tpu.memory_space<vmem>>, vector<1x16xf32>
      tpu.vector_store %arg6[%c11, %c0_28], %31 {strides = array<i32>} : memref<24x128xf32, #tpu.memory_space<vmem>>, vector<1x16xf32>,
      %c0_29 = arith.constant 0 : index
      %c144 = arith.constant 144 : index
      %33 = vector.load %arg5[%c0_29, %c144] : memref<1x256xf32, #tpu.memory_space<vmem>>, vector<1x16xf32>
      %c12 = arith.constant 12 : index
      %c0_30 = arith.constant 0 : index
      %34 = vector.load %arg6[%c12, %c0_30] : memref<24x128xf32, #tpu.memory_space<vmem>>, vector<1x16xf32>
      tpu.vector_store %arg6[%c12, %c0_30], %33 {strides = array<i32>} : memref<24x128xf32, #tpu.memory_space<vmem>>, vector<1x16xf32>,
      %c0_31 = arith.constant 0 : index
      %c160 = arith.constant 160 : index
      %35 = vector.load %arg5[%c0_31, %c160] : memref<1x256xf32, #tpu.memory_space<vmem>>, vector<1x16xf32>
      %c13 = arith.constant 13 : index
      %c0_32 = arith.constant 0 : index
      %36 = vector.load %arg6[%c13, %c0_32] : memref<24x128xf32, #tpu.memory_space<vmem>>, vector<1x16xf32>
      tpu.vector_store %arg6[%c13, %c0_32], %35 {strides = array<i32>} : memref<24x128xf32, #tpu.memory_space<vmem>>, vector<1x16xf32>,
      %c0_33 = arith.constant 0 : index
      %c176 = arith.constant 176 : index
      %37 = vector.load %arg5[%c0_33, %c176] : memref<1x256xf32, #tpu.memory_space<vmem>>, vector<1x16xf32>
      %c14 = arith.constant 14 : index
      %c0_34 = arith.constant 0 : index
      %38 = vector.load %arg6[%c14, %c0_34] : memref<24x128xf32, #tpu.memory_space<vmem>>, vector<1x16xf32>
      tpu.vector_store %arg6[%c14, %c0_34], %37 {strides = array<i32>} : memref<24x128xf32, #tpu.memory_space<vmem>>, vector<1x16xf32>,
      %c0_35 = arith.constant 0 : index
      %c192 = arith.constant 192 : index
      %39 = vector.load %arg5[%c0_35, %c192] : memref<1x256xf32, #tpu.memory_space<vmem>>, vector<1x16xf32>
      %c15 = arith.constant 15 : index
      %c0_36 = arith.constant 0 : index
      %40 = vector.load %arg6[%c15, %c0_36] : memref<24x128xf32, #tpu.memory_space<vmem>>, vector<1x16xf32>
      tpu.vector_store %arg6[%c15, %c0_36], %39 {strides = array<i32>} : memref<24x128xf32, #tpu.memory_space<vmem>>, vector<1x16xf32>,
      %c0_37 = arith.constant 0 : index
      %c208 = arith.constant 208 : index
      %41 = vector.load %arg5[%c0_37, %c208] : memref<1x256xf32, #tpu.memory_space<vmem>>, vector<1x16xf32>
      %c16_38 = arith.constant 16 : index
      %c0_39 = arith.constant 0 : index
      %42 = vector.load %arg6[%c16_38, %c0_39] : memref<24x128xf32, #tpu.memory_space<vmem>>, vector<1x16xf32>
      tpu.vector_store %arg6[%c16_38, %c0_39], %41 {strides = array<i32>} : memref<24x128xf32, #tpu.memory_space<vmem>>, vector<1x16xf32>,
      %c0_40 = arith.constant 0 : index
      %c224 = arith.constant 224 : index
      %43 = vector.load %arg5[%c0_40, %c224] : memref<1x256xf32, #tpu.memory_space<vmem>>, vector<1x16xf32>
      %c17 = arith.constant 17 : index
      %c0_41 = arith.constant 0 : index
      %44 = vector.load %arg6[%c17, %c0_41] : memref<24x128xf32, #tpu.memory_space<vmem>>, vector<1x16xf32>
      tpu.vector_store %arg6[%c17, %c0_41], %43 {strides = array<i32>} : memref<24x128xf32, #tpu.memory_space<vmem>>, vector<1x16xf32>,
      %c0_42 = arith.constant 0 : index
      %c240 = arith.constant 240 : index
      %45 = vector.load %arg5[%c0_42, %c240] : memref<1x256xf32, #tpu.memory_space<vmem>>, vector<1x16xf32>
      %c18 = arith.constant 18 : index
      %c0_43 = arith.constant 0 : index
      %46 = vector.load %arg6[%c18, %c0_43] : memref<24x128xf32, #tpu.memory_space<vmem>>, vector<1x16xf32>
      tpu.vector_store %arg6[%c18, %c0_43], %45 {strides = array<i32>} : memref<24x128xf32, #tpu.memory_space<vmem>>, vector<1x16xf32>,
      %c0_44 = arith.constant 0 : index
      %c0_45 = arith.constant 0 : index
      %47 = vector.load %arg6[%c0_44, %c0_45] : memref<24x128xf32, #tpu.memory_space<vmem>>, vector<24x128xf32>
      %c3_i32 = arith.constant 3 : i32
      %48 = tpu.dynamic_rotate %47 by %c3_i32 dim 1 : vector<24x128xf32>, i32 -> vector<24x128xf32>
      %c0_46 = arith.constant 0 : index
      %c0_47 = arith.constant 0 : index
      %49 = vector.load %arg7[%c0_46, %c0_47] : memref<24x128xf32, #tpu.memory_space<vmem>>, vector<24x128xf32>
      tpu.vector_store %arg7[%c0_46, %c0_47], %48 {strides = array<i32>} : memref<24x128xf32, #tpu.memory_space<vmem>>, vector<24x128xf32>,
      %c0_48 = arith.constant 0 : index
      %50 = memref.load %arg2[%c0_48] : memref<49xf32, #tpu.memory_space<smem>>
      %c7_49 = arith.constant 7 : index
      %51 = memref.load %arg2[%c7_49] : memref<49xf32, #tpu.memory_space<smem>>
      %c14_50 = arith.constant 14 : index
      %52 = memref.load %arg2[%c14_50] : memref<49xf32, #tpu.memory_space<smem>>
      %c21 = arith.constant 21 : index
      %53 = memref.load %arg2[%c21] : memref<49xf32, #tpu.memory_space<smem>>
      %c28 = arith.constant 28 : index
      %54 = memref.load %arg2[%c28] : memref<49xf32, #tpu.memory_space<smem>>
      %c35 = arith.constant 35 : index
      %55 = memref.load %arg2[%c35] : memref<49xf32, #tpu.memory_space<smem>>
      %c42 = arith.constant 42 : index
      %56 = memref.load %arg2[%c42] : memref<49xf32, #tpu.memory_space<smem>>
      %cst_51 = arith.constant 0.000000e+00 : f32
      %57 = vector.broadcast %cst_51 : f32 to vector<16x128xf32>
      %c0_52 = arith.constant 0 : index
      %c0_53 = arith.constant 0 : index
      %58 = vector.load %arg7[%c0_52, %c0_53] : memref<24x128xf32, #tpu.memory_space<vmem>>, vector<16x128xf32>
      %59 = vector.broadcast %50 : f32 to vector<16x128xf32>
      %60 = arith.mulf %58, %59 : vector<16x128xf32>
      %61 = arith.addf %57, %60 : vector<16x128xf32>
      %c1 = arith.constant 1 : index
      %c0_54 = arith.constant 0 : index
      %62 = vector.load %arg7[%c1, %c0_54] : memref<24x128xf32, #tpu.memory_space<vmem>>, vector<16x128xf32>
      %63 = vector.broadcast %51 : f32 to vector<16x128xf32>
      %64 = arith.mulf %62, %63 : vector<16x128xf32>
      %65 = arith.addf %61, %64 : vector<16x128xf32>
      %c2 = arith.constant 2 : index
      %c0_55 = arith.constant 0 : index
      %66 = vector.load %arg7[%c2, %c0_55] : memref<24x128xf32, #tpu.memory_space<vmem>>, vector<16x128xf32>
      %67 = vector.broadcast %52 : f32 to vector<16x128xf32>
      %68 = arith.mulf %66, %67 : vector<16x128xf32>
      %69 = arith.addf %65, %68 : vector<16x128xf32>
      %c3_56 = arith.constant 3 : index
      %c0_57 = arith.constant 0 : index
      %70 = vector.load %arg7[%c3_56, %c0_57] : memref<24x128xf32, #tpu.memory_space<vmem>>, vector<16x128xf32>
      %71 = vector.broadcast %53 : f32 to vector<16x128xf32>
      %72 = arith.mulf %70, %71 : vector<16x128xf32>
      %73 = arith.addf %69, %72 : vector<16x128xf32>
      %c4_58 = arith.constant 4 : index
      %c0_59 = arith.constant 0 : index
      %74 = vector.load %arg7[%c4_58, %c0_59] : memref<24x128xf32, #tpu.memory_space<vmem>>, vector<16x128xf32>
      %75 = vector.broadcast %54 : f32 to vector<16x128xf32>
      %76 = arith.mulf %74, %75 : vector<16x128xf32>
      %77 = arith.addf %73, %76 : vector<16x128xf32>
      %c5_60 = arith.constant 5 : index
      %c0_61 = arith.constant 0 : index
      %78 = vector.load %arg7[%c5_60, %c0_61] : memref<24x128xf32, #tpu.memory_space<vmem>>, vector<16x128xf32>
      %79 = vector.broadcast %55 : f32 to vector<16x128xf32>
      %80 = arith.mulf %78, %79 : vector<16x128xf32>
      %81 = arith.addf %77, %80 : vector<16x128xf32>
      %c6_62 = arith.constant 6 : index
      %c0_63 = arith.constant 0 : index
      %82 = vector.load %arg7[%c6_62, %c0_63] : memref<24x128xf32, #tpu.memory_space<vmem>>, vector<16x128xf32>
      %83 = vector.broadcast %56 : f32 to vector<16x128xf32>
      %84 = arith.mulf %82, %83 : vector<16x128xf32>
      %85 = arith.addf %81, %84 : vector<16x128xf32>
      %c0_64 = arith.constant 0 : index
      %c0_65 = arith.constant 0 : index
      %86 = vector.load %arg8[%c0_64, %c0_65] : memref<16x128xf32, #tpu.memory_space<vmem>>, vector<16x128xf32>
      tpu.vector_store %arg8[%c0_64, %c0_65], %85 {strides = array<i32>} : memref<16x128xf32, #tpu.memory_space<vmem>>, vector<16x128xf32>,
      %c0_66 = arith.constant 0 : index
      %c0_67 = arith.constant 0 : index
      %87 = vector.load %arg6[%c0_66, %c0_67] : memref<24x128xf32, #tpu.memory_space<vmem>>, vector<24x128xf32>
      %c2_i32 = arith.constant 2 : i32
      %88 = tpu.dynamic_rotate %87 by %c2_i32 dim 1 : vector<24x128xf32>, i32 -> vector<24x128xf32>
      %c0_68 = arith.constant 0 : index
      %c0_69 = arith.constant 0 : index
      %89 = vector.load %arg7[%c0_68, %c0_69] : memref<24x128xf32, #tpu.memory_space<vmem>>, vector<24x128xf32>
      tpu.vector_store %arg7[%c0_68, %c0_69], %88 {strides = array<i32>} : memref<24x128xf32, #tpu.memory_space<vmem>>, vector<24x128xf32>,
      %c1_70 = arith.constant 1 : index
      %90 = memref.load %arg2[%c1_70] : memref<49xf32, #tpu.memory_space<smem>>
      %c8_71 = arith.constant 8 : index
      %91 = memref.load %arg2[%c8_71] : memref<49xf32, #tpu.memory_space<smem>>
      %c15_72 = arith.constant 15 : index
      %92 = memref.load %arg2[%c15_72] : memref<49xf32, #tpu.memory_space<smem>>
      %c22 = arith.constant 22 : index
      %93 = memref.load %arg2[%c22] : memref<49xf32, #tpu.memory_space<smem>>
      %c29 = arith.constant 29 : index
      %94 = memref.load %arg2[%c29] : memref<49xf32, #tpu.memory_space<smem>>
      %c36 = arith.constant 36 : index
      %95 = memref.load %arg2[%c36] : memref<49xf32, #tpu.memory_space<smem>>
      %c43 = arith.constant 43 : index
      %96 = memref.load %arg2[%c43] : memref<49xf32, #tpu.memory_space<smem>>
      %c0_73 = arith.constant 0 : index
      %c0_74 = arith.constant 0 : index
      %97 = vector.load %arg8[%c0_73, %c0_74] : memref<16x128xf32, #tpu.memory_space<vmem>>, vector<16x128xf32>
      %c0_75 = arith.constant 0 : index
      %c0_76 = arith.constant 0 : index
      %98 = vector.load %arg7[%c0_75, %c0_76] : memref<24x128xf32, #tpu.memory_space<vmem>>, vector<16x128xf32>
      %99 = vector.broadcast %90 : f32 to vector<16x128xf32>
      %100 = arith.mulf %98, %99 : vector<16x128xf32>
      %101 = arith.addf %97, %100 : vector<16x128xf32>
      %c1_77 = arith.constant 1 : index
      %c0_78 = arith.constant 0 : index
      %102 = vector.load %arg7[%c1_77, %c0_78] : memref<24x128xf32, #tpu.memory_space<vmem>>, vector<16x128xf32>
      %103 = vector.broadcast %91 : f32 to vector<16x128xf32>
      %104 = arith.mulf %102, %103 : vector<16x128xf32>
      %105 = arith.addf %101, %104 : vector<16x128xf32>
      %c2_79 = arith.constant 2 : index
      %c0_80 = arith.constant 0 : index
      %106 = vector.load %arg7[%c2_79, %c0_80] : memref<24x128xf32, #tpu.memory_space<vmem>>, vector<16x128xf32>
      %107 = vector.broadcast %92 : f32 to vector<16x128xf32>
      %108 = arith.mulf %106, %107 : vector<16x128xf32>
      %109 = arith.addf %105, %108 : vector<16x128xf32>
      %c3_81 = arith.constant 3 : index
      %c0_82 = arith.constant 0 : index
      %110 = vector.load %arg7[%c3_81, %c0_82] : memref<24x128xf32, #tpu.memory_space<vmem>>, vector<16x128xf32>
      %111 = vector.broadcast %93 : f32 to vector<16x128xf32>
      %112 = arith.mulf %110, %111 : vector<16x128xf32>
      %113 = arith.addf %109, %112 : vector<16x128xf32>
      %c4_83 = arith.constant 4 : index
      %c0_84 = arith.constant 0 : index
      %114 = vector.load %arg7[%c4_83, %c0_84] : memref<24x128xf32, #tpu.memory_space<vmem>>, vector<16x128xf32>
      %115 = vector.broadcast %94 : f32 to vector<16x128xf32>
      %116 = arith.mulf %114, %115 : vector<16x128xf32>
      %117 = arith.addf %113, %116 : vector<16x128xf32>
      %c5_85 = arith.constant 5 : index
      %c0_86 = arith.constant 0 : index
      %118 = vector.load %arg7[%c5_85, %c0_86] : memref<24x128xf32, #tpu.memory_space<vmem>>, vector<16x128xf32>
      %119 = vector.broadcast %95 : f32 to vector<16x128xf32>
      %120 = arith.mulf %118, %119 : vector<16x128xf32>
      %121 = arith.addf %117, %120 : vector<16x128xf32>
      %c6_87 = arith.constant 6 : index
      %c0_88 = arith.constant 0 : index
      %122 = vector.load %arg7[%c6_87, %c0_88] : memref<24x128xf32, #tpu.memory_space<vmem>>, vector<16x128xf32>
      %123 = vector.broadcast %96 : f32 to vector<16x128xf32>
      %124 = arith.mulf %122, %123 : vector<16x128xf32>
      %125 = arith.addf %121, %124 : vector<16x128xf32>
      %c0_89 = arith.constant 0 : index
      %c0_90 = arith.constant 0 : index
      %126 = vector.load %arg8[%c0_89, %c0_90] : memref<16x128xf32, #tpu.memory_space<vmem>>, vector<16x128xf32>
      tpu.vector_store %arg8[%c0_89, %c0_90], %125 {strides = array<i32>} : memref<16x128xf32, #tpu.memory_space<vmem>>, vector<16x128xf32>,
      %c0_91 = arith.constant 0 : index
      %c0_92 = arith.constant 0 : index
      %127 = vector.load %arg6[%c0_91, %c0_92] : memref<24x128xf32, #tpu.memory_space<vmem>>, vector<24x128xf32>
      %c1_i32 = arith.constant 1 : i32
      %128 = tpu.dynamic_rotate %127 by %c1_i32 dim 1 : vector<24x128xf32>, i32 -> vector<24x128xf32>
      %c0_93 = arith.constant 0 : index
      %c0_94 = arith.constant 0 : index
      %129 = vector.load %arg7[%c0_93, %c0_94] : memref<24x128xf32, #tpu.memory_space<vmem>>, vector<24x128xf32>
      tpu.vector_store %arg7[%c0_93, %c0_94], %128 {strides = array<i32>} : memref<24x128xf32, #tpu.memory_space<vmem>>, vector<24x128xf32>,
      %c2_95 = arith.constant 2 : index
      %130 = memref.load %arg2[%c2_95] : memref<49xf32, #tpu.memory_space<smem>>
      %c9_96 = arith.constant 9 : index
      %131 = memref.load %arg2[%c9_96] : memref<49xf32, #tpu.memory_space<smem>>
      %c16_97 = arith.constant 16 : index
      %132 = memref.load %arg2[%c16_97] : memref<49xf32, #tpu.memory_space<smem>>
      %c23 = arith.constant 23 : index
      %133 = memref.load %arg2[%c23] : memref<49xf32, #tpu.memory_space<smem>>
      %c30 = arith.constant 30 : index
      %134 = memref.load %arg2[%c30] : memref<49xf32, #tpu.memory_space<smem>>
      %c37 = arith.constant 37 : index
      %135 = memref.load %arg2[%c37] : memref<49xf32, #tpu.memory_space<smem>>
      %c44 = arith.constant 44 : index
      %136 = memref.load %arg2[%c44] : memref<49xf32, #tpu.memory_space<smem>>
      %c0_98 = arith.constant 0 : index
      %c0_99 = arith.constant 0 : index
      %137 = vector.load %arg8[%c0_98, %c0_99] : memref<16x128xf32, #tpu.memory_space<vmem>>, vector<16x128xf32>
      %c0_100 = arith.constant 0 : index
      %c0_101 = arith.constant 0 : index
      %138 = vector.load %arg7[%c0_100, %c0_101] : memref<24x128xf32, #tpu.memory_space<vmem>>, vector<16x128xf32>
      %139 = vector.broadcast %130 : f32 to vector<16x128xf32>
      %140 = arith.mulf %138, %139 : vector<16x128xf32>
      %141 = arith.addf %137, %140 : vector<16x128xf32>
      %c1_102 = arith.constant 1 : index
      %c0_103 = arith.constant 0 : index
      %142 = vector.load %arg7[%c1_102, %c0_103] : memref<24x128xf32, #tpu.memory_space<vmem>>, vector<16x128xf32>
      %143 = vector.broadcast %131 : f32 to vector<16x128xf32>
      %144 = arith.mulf %142, %143 : vector<16x128xf32>
      %145 = arith.addf %141, %144 : vector<16x128xf32>
      %c2_104 = arith.constant 2 : index
      %c0_105 = arith.constant 0 : index
      %146 = vector.load %arg7[%c2_104, %c0_105] : memref<24x128xf32, #tpu.memory_space<vmem>>, vector<16x128xf32>
      %147 = vector.broadcast %132 : f32 to vector<16x128xf32>
      %148 = arith.mulf %146, %147 : vector<16x128xf32>
      %149 = arith.addf %145, %148 : vector<16x128xf32>
      %c3_106 = arith.constant 3 : index
      %c0_107 = arith.constant 0 : index
      %150 = vector.load %arg7[%c3_106, %c0_107] : memref<24x128xf32, #tpu.memory_space<vmem>>, vector<16x128xf32>
      %151 = vector.broadcast %133 : f32 to vector<16x128xf32>
      %152 = arith.mulf %150, %151 : vector<16x128xf32>
      %153 = arith.addf %149, %152 : vector<16x128xf32>
      %c4_108 = arith.constant 4 : index
      %c0_109 = arith.constant 0 : index
      %154 = vector.load %arg7[%c4_108, %c0_109] : memref<24x128xf32, #tpu.memory_space<vmem>>, vector<16x128xf32>
      %155 = vector.broadcast %134 : f32 to vector<16x128xf32>
      %156 = arith.mulf %154, %155 : vector<16x128xf32>
      %157 = arith.addf %153, %156 : vector<16x128xf32>
      %c5_110 = arith.constant 5 : index
      %c0_111 = arith.constant 0 : index
      %158 = vector.load %arg7[%c5_110, %c0_111] : memref<24x128xf32, #tpu.memory_space<vmem>>, vector<16x128xf32>
      %159 = vector.broadcast %135 : f32 to vector<16x128xf32>
      %160 = arith.mulf %158, %159 : vector<16x128xf32>
      %161 = arith.addf %157, %160 : vector<16x128xf32>
      %c6_112 = arith.constant 6 : index
      %c0_113 = arith.constant 0 : index
      %162 = vector.load %arg7[%c6_112, %c0_113] : memref<24x128xf32, #tpu.memory_space<vmem>>, vector<16x128xf32>
      %163 = vector.broadcast %136 : f32 to vector<16x128xf32>
      %164 = arith.mulf %162, %163 : vector<16x128xf32>
      %165 = arith.addf %161, %164 : vector<16x128xf32>
      %c0_114 = arith.constant 0 : index
      %c0_115 = arith.constant 0 : index
      %166 = vector.load %arg8[%c0_114, %c0_115] : memref<16x128xf32, #tpu.memory_space<vmem>>, vector<16x128xf32>
      tpu.vector_store %arg8[%c0_114, %c0_115], %165 {strides = array<i32>} : memref<16x128xf32, #tpu.memory_space<vmem>>, vector<16x128xf32>,
      %c3_116 = arith.constant 3 : index
      %167 = memref.load %arg2[%c3_116] : memref<49xf32, #tpu.memory_space<smem>>
      %c10_117 = arith.constant 10 : index
      %168 = memref.load %arg2[%c10_117] : memref<49xf32, #tpu.memory_space<smem>>
      %c17_118 = arith.constant 17 : index
      %169 = memref.load %arg2[%c17_118] : memref<49xf32, #tpu.memory_space<smem>>
      %c24 = arith.constant 24 : index
      %170 = memref.load %arg2[%c24] : memref<49xf32, #tpu.memory_space<smem>>
      %c31 = arith.constant 31 : index
      %171 = memref.load %arg2[%c31] : memref<49xf32, #tpu.memory_space<smem>>
      %c38 = arith.constant 38 : index
      %172 = memref.load %arg2[%c38] : memref<49xf32, #tpu.memory_space<smem>>
      %c45 = arith.constant 45 : index
      %173 = memref.load %arg2[%c45] : memref<49xf32, #tpu.memory_space<smem>>
      %c0_119 = arith.constant 0 : index
      %c0_120 = arith.constant 0 : index
      %174 = vector.load %arg8[%c0_119, %c0_120] : memref<16x128xf32, #tpu.memory_space<vmem>>, vector<16x128xf32>
      %c0_121 = arith.constant 0 : index
      %c0_122 = arith.constant 0 : index
      %175 = vector.load %arg6[%c0_121, %c0_122] : memref<24x128xf32, #tpu.memory_space<vmem>>, vector<16x128xf32>
      %176 = vector.broadcast %167 : f32 to vector<16x128xf32>
      %177 = arith.mulf %175, %176 : vector<16x128xf32>
      %178 = arith.addf %174, %177 : vector<16x128xf32>
      %c1_123 = arith.constant 1 : index
      %c0_124 = arith.constant 0 : index
      %179 = vector.load %arg6[%c1_123, %c0_124] : memref<24x128xf32, #tpu.memory_space<vmem>>, vector<16x128xf32>
      %180 = vector.broadcast %168 : f32 to vector<16x128xf32>
      %181 = arith.mulf %179, %180 : vector<16x128xf32>
      %182 = arith.addf %178, %181 : vector<16x128xf32>
      %c2_125 = arith.constant 2 : index
      %c0_126 = arith.constant 0 : index
      %183 = vector.load %arg6[%c2_125, %c0_126] : memref<24x128xf32, #tpu.memory_space<vmem>>, vector<16x128xf32>
      %184 = vector.broadcast %169 : f32 to vector<16x128xf32>
      %185 = arith.mulf %183, %184 : vector<16x128xf32>
      %186 = arith.addf %182, %185 : vector<16x128xf32>
      %c3_127 = arith.constant 3 : index
      %c0_128 = arith.constant 0 : index
      %187 = vector.load %arg6[%c3_127, %c0_128] : memref<24x128xf32, #tpu.memory_space<vmem>>, vector<16x128xf32>
      %188 = vector.broadcast %170 : f32 to vector<16x128xf32>
      %189 = arith.mulf %187, %188 : vector<16x128xf32>
      %190 = arith.addf %186, %189 : vector<16x128xf32>
      %c4_129 = arith.constant 4 : index
      %c0_130 = arith.constant 0 : index
      %191 = vector.load %arg6[%c4_129, %c0_130] : memref<24x128xf32, #tpu.memory_space<vmem>>, vector<16x128xf32>
      %192 = vector.broadcast %171 : f32 to vector<16x128xf32>
      %193 = arith.mulf %191, %192 : vector<16x128xf32>
      %194 = arith.addf %190, %193 : vector<16x128xf32>
      %c5_131 = arith.constant 5 : index
      %c0_132 = arith.constant 0 : index
      %195 = vector.load %arg6[%c5_131, %c0_132] : memref<24x128xf32, #tpu.memory_space<vmem>>, vector<16x128xf32>
      %196 = vector.broadcast %172 : f32 to vector<16x128xf32>
      %197 = arith.mulf %195, %196 : vector<16x128xf32>
      %198 = arith.addf %194, %197 : vector<16x128xf32>
      %c6_133 = arith.constant 6 : index
      %c0_134 = arith.constant 0 : index
      %199 = vector.load %arg6[%c6_133, %c0_134] : memref<24x128xf32, #tpu.memory_space<vmem>>, vector<16x128xf32>
      %200 = vector.broadcast %173 : f32 to vector<16x128xf32>
      %201 = arith.mulf %199, %200 : vector<16x128xf32>
      %202 = arith.addf %198, %201 : vector<16x128xf32>
      %c0_135 = arith.constant 0 : index
      %c0_136 = arith.constant 0 : index
      %203 = vector.load %arg8[%c0_135, %c0_136] : memref<16x128xf32, #tpu.memory_space<vmem>>, vector<16x128xf32>
      tpu.vector_store %arg8[%c0_135, %c0_136], %202 {strides = array<i32>} : memref<16x128xf32, #tpu.memory_space<vmem>>, vector<16x128xf32>,
      %c0_137 = arith.constant 0 : index
      %c0_138 = arith.constant 0 : index
      %204 = vector.load %arg6[%c0_137, %c0_138] : memref<24x128xf32, #tpu.memory_space<vmem>>, vector<24x128xf32>
      %c127_i32 = arith.constant 127 : i32
      %205 = tpu.dynamic_rotate %204 by %c127_i32 dim 1 : vector<24x128xf32>, i32 -> vector<24x128xf32>
      %c0_139 = arith.constant 0 : index
      %c0_140 = arith.constant 0 : index
      %206 = vector.load %arg7[%c0_139, %c0_140] : memref<24x128xf32, #tpu.memory_space<vmem>>, vector<24x128xf32>
      tpu.vector_store %arg7[%c0_139, %c0_140], %205 {strides = array<i32>} : memref<24x128xf32, #tpu.memory_space<vmem>>, vector<24x128xf32>,
      %c4_141 = arith.constant 4 : index
      %207 = memref.load %arg2[%c4_141] : memref<49xf32, #tpu.memory_space<smem>>
      %c11_142 = arith.constant 11 : index
      %208 = memref.load %arg2[%c11_142] : memref<49xf32, #tpu.memory_space<smem>>
      %c18_143 = arith.constant 18 : index
      %209 = memref.load %arg2[%c18_143] : memref<49xf32, #tpu.memory_space<smem>>
      %c25 = arith.constant 25 : index
      %210 = memref.load %arg2[%c25] : memref<49xf32, #tpu.memory_space<smem>>
      %c32_144 = arith.constant 32 : index
      %211 = memref.load %arg2[%c32_144] : memref<49xf32, #tpu.memory_space<smem>>
      %c39 = arith.constant 39 : index
      %212 = memref.load %arg2[%c39] : memref<49xf32, #tpu.memory_space<smem>>
      %c46 = arith.constant 46 : index
      %213 = memref.load %arg2[%c46] : memref<49xf32, #tpu.memory_space<smem>>
      %c0_145 = arith.constant 0 : index
      %c0_146 = arith.constant 0 : index
      %214 = vector.load %arg8[%c0_145, %c0_146] : memref<16x128xf32, #tpu.memory_space<vmem>>, vector<16x128xf32>
      %c0_147 = arith.constant 0 : index
      %c0_148 = arith.constant 0 : index
      %215 = vector.load %arg7[%c0_147, %c0_148] : memref<24x128xf32, #tpu.memory_space<vmem>>, vector<16x128xf32>
      %216 = vector.broadcast %207 : f32 to vector<16x128xf32>
      %217 = arith.mulf %215, %216 : vector<16x128xf32>
      %218 = arith.addf %214, %217 : vector<16x128xf32>
      %c1_149 = arith.constant 1 : index
      %c0_150 = arith.constant 0 : index
      %219 = vector.load %arg7[%c1_149, %c0_150] : memref<24x128xf32, #tpu.memory_space<vmem>>, vector<16x128xf32>
      %220 = vector.broadcast %208 : f32 to vector<16x128xf32>
      %221 = arith.mulf %219, %220 : vector<16x128xf32>
      %222 = arith.addf %218, %221 : vector<16x128xf32>
      %c2_151 = arith.constant 2 : index
      %c0_152 = arith.constant 0 : index
      %223 = vector.load %arg7[%c2_151, %c0_152] : memref<24x128xf32, #tpu.memory_space<vmem>>, vector<16x128xf32>
      %224 = vector.broadcast %209 : f32 to vector<16x128xf32>
      %225 = arith.mulf %223, %224 : vector<16x128xf32>
      %226 = arith.addf %222, %225 : vector<16x128xf32>
      %c3_153 = arith.constant 3 : index
      %c0_154 = arith.constant 0 : index
      %227 = vector.load %arg7[%c3_153, %c0_154] : memref<24x128xf32, #tpu.memory_space<vmem>>, vector<16x128xf32>
      %228 = vector.broadcast %210 : f32 to vector<16x128xf32>
      %229 = arith.mulf %227, %228 : vector<16x128xf32>
      %230 = arith.addf %226, %229 : vector<16x128xf32>
      %c4_155 = arith.constant 4 : index
      %c0_156 = arith.constant 0 : index
      %231 = vector.load %arg7[%c4_155, %c0_156] : memref<24x128xf32, #tpu.memory_space<vmem>>, vector<16x128xf32>
      %232 = vector.broadcast %211 : f32 to vector<16x128xf32>
      %233 = arith.mulf %231, %232 : vector<16x128xf32>
      %234 = arith.addf %230, %233 : vector<16x128xf32>
      %c5_157 = arith.constant 5 : index
      %c0_158 = arith.constant 0 : index
      %235 = vector.load %arg7[%c5_157, %c0_158] : memref<24x128xf32, #tpu.memory_space<vmem>>, vector<16x128xf32>
      %236 = vector.broadcast %212 : f32 to vector<16x128xf32>
      %237 = arith.mulf %235, %236 : vector<16x128xf32>
      %238 = arith.addf %234, %237 : vector<16x128xf32>
      %c6_159 = arith.constant 6 : index
      %c0_160 = arith.constant 0 : index
      %239 = vector.load %arg7[%c6_159, %c0_160] : memref<24x128xf32, #tpu.memory_space<vmem>>, vector<16x128xf32>
      %240 = vector.broadcast %213 : f32 to vector<16x128xf32>
      %241 = arith.mulf %239, %240 : vector<16x128xf32>
      %242 = arith.addf %238, %241 : vector<16x128xf32>
      %c0_161 = arith.constant 0 : index
      %c0_162 = arith.constant 0 : index
      %243 = vector.load %arg8[%c0_161, %c0_162] : memref<16x128xf32, #tpu.memory_space<vmem>>, vector<16x128xf32>
      tpu.vector_store %arg8[%c0_161, %c0_162], %242 {strides = array<i32>} : memref<16x128xf32, #tpu.memory_space<vmem>>, vector<16x128xf32>,
      %c0_163 = arith.constant 0 : index
      %c0_164 = arith.constant 0 : index
      %244 = vector.load %arg6[%c0_163, %c0_164] : memref<24x128xf32, #tpu.memory_space<vmem>>, vector<24x128xf32>
      %c126_i32 = arith.constant 126 : i32
      %245 = tpu.dynamic_rotate %244 by %c126_i32 dim 1 : vector<24x128xf32>, i32 -> vector<24x128xf32>
      %c0_165 = arith.constant 0 : index
      %c0_166 = arith.constant 0 : index
      %246 = vector.load %arg7[%c0_165, %c0_166] : memref<24x128xf32, #tpu.memory_space<vmem>>, vector<24x128xf32>
      tpu.vector_store %arg7[%c0_165, %c0_166], %245 {strides = array<i32>} : memref<24x128xf32, #tpu.memory_space<vmem>>, vector<24x128xf32>,
      %c5_167 = arith.constant 5 : index
      %247 = memref.load %arg2[%c5_167] : memref<49xf32, #tpu.memory_space<smem>>
      %c12_168 = arith.constant 12 : index
      %248 = memref.load %arg2[%c12_168] : memref<49xf32, #tpu.memory_space<smem>>
      %c19 = arith.constant 19 : index
      %249 = memref.load %arg2[%c19] : memref<49xf32, #tpu.memory_space<smem>>
      %c26 = arith.constant 26 : index
      %250 = memref.load %arg2[%c26] : memref<49xf32, #tpu.memory_space<smem>>
      %c33 = arith.constant 33 : index
      %251 = memref.load %arg2[%c33] : memref<49xf32, #tpu.memory_space<smem>>
      %c40 = arith.constant 40 : index
      %252 = memref.load %arg2[%c40] : memref<49xf32, #tpu.memory_space<smem>>
      %c47 = arith.constant 47 : index
      %253 = memref.load %arg2[%c47] : memref<49xf32, #tpu.memory_space<smem>>
      %c0_169 = arith.constant 0 : index
      %c0_170 = arith.constant 0 : index
      %254 = vector.load %arg8[%c0_169, %c0_170] : memref<16x128xf32, #tpu.memory_space<vmem>>, vector<16x128xf32>
      %c0_171 = arith.constant 0 : index
      %c0_172 = arith.constant 0 : index
      %255 = vector.load %arg7[%c0_171, %c0_172] : memref<24x128xf32, #tpu.memory_space<vmem>>, vector<16x128xf32>
      %256 = vector.broadcast %247 : f32 to vector<16x128xf32>
      %257 = arith.mulf %255, %256 : vector<16x128xf32>
      %258 = arith.addf %254, %257 : vector<16x128xf32>
      %c1_173 = arith.constant 1 : index
      %c0_174 = arith.constant 0 : index
      %259 = vector.load %arg7[%c1_173, %c0_174] : memref<24x128xf32, #tpu.memory_space<vmem>>, vector<16x128xf32>
      %260 = vector.broadcast %248 : f32 to vector<16x128xf32>
      %261 = arith.mulf %259, %260 : vector<16x128xf32>
      %262 = arith.addf %258, %261 : vector<16x128xf32>
      %c2_175 = arith.constant 2 : index
      %c0_176 = arith.constant 0 : index
      %263 = vector.load %arg7[%c2_175, %c0_176] : memref<24x128xf32, #tpu.memory_space<vmem>>, vector<16x128xf32>
      %264 = vector.broadcast %249 : f32 to vector<16x128xf32>
      %265 = arith.mulf %263, %264 : vector<16x128xf32>
      %266 = arith.addf %262, %265 : vector<16x128xf32>
      %c3_177 = arith.constant 3 : index
      %c0_178 = arith.constant 0 : index
      %267 = vector.load %arg7[%c3_177, %c0_178] : memref<24x128xf32, #tpu.memory_space<vmem>>, vector<16x128xf32>
      %268 = vector.broadcast %250 : f32 to vector<16x128xf32>
      %269 = arith.mulf %267, %268 : vector<16x128xf32>
      %270 = arith.addf %266, %269 : vector<16x128xf32>
      %c4_179 = arith.constant 4 : index
      %c0_180 = arith.constant 0 : index
      %271 = vector.load %arg7[%c4_179, %c0_180] : memref<24x128xf32, #tpu.memory_space<vmem>>, vector<16x128xf32>
      %272 = vector.broadcast %251 : f32 to vector<16x128xf32>
      %273 = arith.mulf %271, %272 : vector<16x128xf32>
      %274 = arith.addf %270, %273 : vector<16x128xf32>
      %c5_181 = arith.constant 5 : index
      %c0_182 = arith.constant 0 : index
      %275 = vector.load %arg7[%c5_181, %c0_182] : memref<24x128xf32, #tpu.memory_space<vmem>>, vector<16x128xf32>
      %276 = vector.broadcast %252 : f32 to vector<16x128xf32>
      %277 = arith.mulf %275, %276 : vector<16x128xf32>
      %278 = arith.addf %274, %277 : vector<16x128xf32>
      %c6_183 = arith.constant 6 : index
      %c0_184 = arith.constant 0 : index
      %279 = vector.load %arg7[%c6_183, %c0_184] : memref<24x128xf32, #tpu.memory_space<vmem>>, vector<16x128xf32>
      %280 = vector.broadcast %253 : f32 to vector<16x128xf32>
      %281 = arith.mulf %279, %280 : vector<16x128xf32>
      %282 = arith.addf %278, %281 : vector<16x128xf32>
      %c0_185 = arith.constant 0 : index
      %c0_186 = arith.constant 0 : index
      %283 = vector.load %arg8[%c0_185, %c0_186] : memref<16x128xf32, #tpu.memory_space<vmem>>, vector<16x128xf32>
      tpu.vector_store %arg8[%c0_185, %c0_186], %282 {strides = array<i32>} : memref<16x128xf32, #tpu.memory_space<vmem>>, vector<16x128xf32>,
      %c0_187 = arith.constant 0 : index
      %c0_188 = arith.constant 0 : index
      %284 = vector.load %arg6[%c0_187, %c0_188] : memref<24x128xf32, #tpu.memory_space<vmem>>, vector<24x128xf32>
      %c125_i32 = arith.constant 125 : i32
      %285 = tpu.dynamic_rotate %284 by %c125_i32 dim 1 : vector<24x128xf32>, i32 -> vector<24x128xf32>
      %c0_189 = arith.constant 0 : index
      %c0_190 = arith.constant 0 : index
      %286 = vector.load %arg7[%c0_189, %c0_190] : memref<24x128xf32, #tpu.memory_space<vmem>>, vector<24x128xf32>
      tpu.vector_store %arg7[%c0_189, %c0_190], %285 {strides = array<i32>} : memref<24x128xf32, #tpu.memory_space<vmem>>, vector<24x128xf32>,
      %c6_191 = arith.constant 6 : index
      %287 = memref.load %arg2[%c6_191] : memref<49xf32, #tpu.memory_space<smem>>
      %c13_192 = arith.constant 13 : index
      %288 = memref.load %arg2[%c13_192] : memref<49xf32, #tpu.memory_space<smem>>
      %c20 = arith.constant 20 : index
      %289 = memref.load %arg2[%c20] : memref<49xf32, #tpu.memory_space<smem>>
      %c27 = arith.constant 27 : index
      %290 = memref.load %arg2[%c27] : memref<49xf32, #tpu.memory_space<smem>>
      %c34 = arith.constant 34 : index
      %291 = memref.load %arg2[%c34] : memref<49xf32, #tpu.memory_space<smem>>
      %c41 = arith.constant 41 : index
      %292 = memref.load %arg2[%c41] : memref<49xf32, #tpu.memory_space<smem>>
      %c48_193 = arith.constant 48 : index
      %293 = memref.load %arg2[%c48_193] : memref<49xf32, #tpu.memory_space<smem>>
      %c0_194 = arith.constant 0 : index
      %c0_195 = arith.constant 0 : index
      %294 = vector.load %arg8[%c0_194, %c0_195] : memref<16x128xf32, #tpu.memory_space<vmem>>, vector<16x128xf32>
      %c0_196 = arith.constant 0 : index
      %c0_197 = arith.constant 0 : index
      %295 = vector.load %arg7[%c0_196, %c0_197] : memref<24x128xf32, #tpu.memory_space<vmem>>, vector<16x128xf32>
      %296 = vector.broadcast %287 : f32 to vector<16x128xf32>
      %297 = arith.mulf %295, %296 : vector<16x128xf32>
      %298 = arith.addf %294, %297 : vector<16x128xf32>
      %c1_198 = arith.constant 1 : index
      %c0_199 = arith.constant 0 : index
      %299 = vector.load %arg7[%c1_198, %c0_199] : memref<24x128xf32, #tpu.memory_space<vmem>>, vector<16x128xf32>
      %300 = vector.broadcast %288 : f32 to vector<16x128xf32>
      %301 = arith.mulf %299, %300 : vector<16x128xf32>
      %302 = arith.addf %298, %301 : vector<16x128xf32>
      %c2_200 = arith.constant 2 : index
      %c0_201 = arith.constant 0 : index
      %303 = vector.load %arg7[%c2_200, %c0_201] : memref<24x128xf32, #tpu.memory_space<vmem>>, vector<16x128xf32>
      %304 = vector.broadcast %289 : f32 to vector<16x128xf32>
      %305 = arith.mulf %303, %304 : vector<16x128xf32>
      %306 = arith.addf %302, %305 : vector<16x128xf32>
      %c3_202 = arith.constant 3 : index
      %c0_203 = arith.constant 0 : index
      %307 = vector.load %arg7[%c3_202, %c0_203] : memref<24x128xf32, #tpu.memory_space<vmem>>, vector<16x128xf32>
      %308 = vector.broadcast %290 : f32 to vector<16x128xf32>
      %309 = arith.mulf %307, %308 : vector<16x128xf32>
      %310 = arith.addf %306, %309 : vector<16x128xf32>
      %c4_204 = arith.constant 4 : index
      %c0_205 = arith.constant 0 : index
      %311 = vector.load %arg7[%c4_204, %c0_205] : memref<24x128xf32, #tpu.memory_space<vmem>>, vector<16x128xf32>
      %312 = vector.broadcast %291 : f32 to vector<16x128xf32>
      %313 = arith.mulf %311, %312 : vector<16x128xf32>
      %314 = arith.addf %310, %313 : vector<16x128xf32>
      %c5_206 = arith.constant 5 : index
      %c0_207 = arith.constant 0 : index
      %315 = vector.load %arg7[%c5_206, %c0_207] : memref<24x128xf32, #tpu.memory_space<vmem>>, vector<16x128xf32>
      %316 = vector.broadcast %292 : f32 to vector<16x128xf32>
      %317 = arith.mulf %315, %316 : vector<16x128xf32>
      %318 = arith.addf %314, %317 : vector<16x128xf32>
      %c6_208 = arith.constant 6 : index
      %c0_209 = arith.constant 0 : index
      %319 = vector.load %arg7[%c6_208, %c0_209] : memref<24x128xf32, #tpu.memory_space<vmem>>, vector<16x128xf32>
      %320 = vector.broadcast %293 : f32 to vector<16x128xf32>
      %321 = arith.mulf %319, %320 : vector<16x128xf32>
      %322 = arith.addf %318, %321 : vector<16x128xf32>
      %c0_210 = arith.constant 0 : index
      %c0_211 = arith.constant 0 : index
      %323 = vector.load %arg8[%c0_210, %c0_211] : memref<16x128xf32, #tpu.memory_space<vmem>>, vector<16x128xf32>
      tpu.vector_store %arg8[%c0_210, %c0_211], %322 {strides = array<i32>} : memref<16x128xf32, #tpu.memory_space<vmem>>, vector<16x128xf32>,
      %c0_212 = arith.constant 0 : index
      %c0_213 = arith.constant 0 : index
      %324 = vector.load %arg8[%c0_212, %c0_213] : memref<16x128xf32, #tpu.memory_space<vmem>>, vector<16x128xf32>
      %325 = arith.negf %324 : vector<16x128xf32>
      %326 = math.exp %325 : vector<16x128xf32>
      %cst_214 = arith.constant 1.000000e+00 : f32
      %327 = vector.broadcast %cst_214 : f32 to vector<16x128xf32>
      %328 = arith.addf %327, %326 : vector<16x128xf32>
      %329 = arith.divf %327, %328 : vector<16x128xf32>
      %c0_215 = arith.constant 0 : index
      %c0_216 = arith.constant 0 : index
      %c0_217 = arith.constant 0 : index
      %330 = vector.load %arg4[%c0_215, %c0_216, %c0_217] : memref<1x16x128xf32, #tpu.memory_space<vmem>>, vector<1x16x128xf32>
      %331 = vector.shape_cast %330 : vector<1x16x128xf32> to vector<16x128xf32>
      %332 = vector.shape_cast %329 : vector<16x128xf32> to vector<1x16x128xf32>
      tpu.vector_store %arg4[%c0_215, %c0_216, %c0_217], %332 {strides = array<i32>} : memref<1x16x128xf32, #tpu.memory_space<vmem>>, vector<1x16x128xf32>,
    } else {
    }
    return
  }
  func.func @transform_0(%arg0: i32, %arg1: i32) -> i32 {
    %c0_i32 = arith.constant 0 : i32
    %c0_i32_0 = arith.constant 0 : i32
    return %c0_i32 : i32
  }
  func.func @transform_1(%arg0: i32, %arg1: i32) -> (i32, i32, i32) {
    %c0_i32 = arith.constant 0 : i32
    %c0_i32_0 = arith.constant 0 : i32
    return %arg0, %arg1, %c0_i32 : i32, i32, i32
  }
  func.func @transform_2(%arg0: i32, %arg1: i32) -> (i32, i32, i32) {
    %c0_i32 = arith.constant 0 : i32
    %c0_i32_0 = arith.constant 0 : i32
    %c0_i32_1 = arith.constant 0 : i32
    return %arg0, %c0_i32, %c0_i32_0 : i32, i32, i32
  }
}

</mosaic_0001>

<bundles_post_ra>
// kernel: tpu_custom_call.1
= control target key start
LH: loop header
LB: loop body
LE: loop exit
PB: predicated region body
PF: predicated region fallthrough
CT: control target
= control target key end

     0   :  { %7 = vsyncpa [#allocation9], 0  ;;  %s1898_s0 = inlined_call_operand.hbm [shape: f32[49], index: 0, kind: input, shape index: {}]   ;;  %s1899_s1 = inlined_call_operand.hbm [shape: f32[2,4,256], index: 1, kind: input, shape index: {}]   ;;  %s1900_s2 = inlined_call_operand.hbm [shape: f32[2,16,128], index: 2, kind: output, shape index: {}]  }
   0x1   :  { %8 = vsyncpa [#allocation7], 0 }
   0x2   :  { %10 = vsyncpa [#allocation7 + $0x1], 0 }
   0x3   :  { %11 = vsyncpa [#allocation8], 0 }
   0x4   :  { %13 = vsyncpa [#allocation8 + $0x1], 0  ;;  %s1378_s9 = smov 0   ;;  %s1380_s10 = smov 0  }
   0x5   :  { %s1382_s11 = smov 0   ;;  %s1384_s12 = smov 0  }
   0x6   :  { %s1386_s13 = smov 0   ;;  %s1388_s14 = smov 0  }
   0x7 LB: > { %s1030_s15 = sadd.s32 4294967295, %s1341_s14   ;;  %s1031_s16 = sadd.s32 4294967294, %s1341_s14   ;;  %s1341_s14 = sphi %s1388_s14, %s19_s14   ;;  %s1337_s13 = sphi %s1386_s13, %s1924_s13   ;;  %s1333_s12 = sphi %s1384_s12, %s1923_s12   ;;  %s1329_s11 = sphi %s1382_s11, %s1922_s11   ;;  %s1325_s10 = sphi %s1380_s10, %s1921_s10   ;;  %s1321_s9 = sphi %s1378_s9, %s1920_s9  }
   0x8   : > { %p74_p0 = scmp.ne.s32.totalorder %s1325_s10, %s1321_s9  ;;  %p1412_p1 = scmp.eq.s32.totalorder %s1030_s15, 0 }
   0x9   : > { %p1416_p2 = scmp.eq.s32.totalorder %s1030_s15, 1  ;;  %p104_p3 = scmp.eq.s32.totalorder %s1031_s16, 1 }
   0xa   : > { %s1905_s17 = scalar_select %p1412_p1, 1, 0 }
   0xb   : > { %p1422_p4 = por %p1412_p1, %p74_p0  ;;  %p1032_p5 = scmp.ge.s32.totalorder %s1341_s14, 1 }
   0xc   : > { %p1427_p6 = por %p104_p3, %p74_p0  ;;  %p111_p7 = scmp.lt.s32.totalorder %s1341_s14, 3 }
   0xd   : > { %s1907_s19 = scalar_select %p1422_p4, 1, 0 }
   0xe   : > { %s1908_s20 = scalar_select %p1427_p6, 1, 0 }
   0xf   : > { %p1432_p8 = pnand %p1032_p5, %p111_p7  ;;  %s31_s22 = sadd.s32 1, %s1337_s13 }
  0x10   : > { %p1446_p12 = scmp.ge.s32.totalorder %s31_s22, 2  ;;  %s61_s25 = sadd.s32 1, %s1329_s11 }
  0x11   : > { %p1121_p10 = pneg %p1432_p8  ;;  %p68_p13 = scmp.ne.s32.totalorder %s1329_s11, %s1325_s10 }
  0x12   : > { %p69_p0 = scmp.eq.s32.totalorder %s1341_s14, 0  ;;  %s1212_s28 = scalar_lea.hbm %s1898_s0, 16 }
  0x13   : > { %p1442_p11 = pnand %p1121_p10, %p1412_p1  ;;  %p1213_p3 = scmp.ne.s32.totalorder %s1898_s0, %s1212_s28 }
  0x14   : > { %p1219_p9 = scmp.lt.u32.totalorder %s1212_s28, %s1898_s0 }
  0x15   : > { %p1214_p5 = pneg %p1442_p11 }
  0x17   : > { %p1215_p7 = pnand %p1214_p5, %p1213_p3 }
  0x19   : > { %p1216_p10 = pneg %p1215_p7 }
  0x1b   : > { %p1221_p6 = pnand %p1219_p9, %p1216_p10 }
  0x1d   : > { %1224 = shalt.err (!%p1221_p6)
}
  0x1e   : > { %s1343_s5 = smov [#allocation6]   ;;  %s1926_s22 = smov (%p1446_p12, %s31_s22), 0 }
  0x1f   : > { %1124 = dma.hbm_to_smem (!%p1442_p11), %s1898_s0, 16, %s1343_s5, [#allocation9]  }
  0x20   : > { %p1477_p6 = por %p69_p0, %p68_p13  ;;  %p1486_p9 = por %p1416_p2, %p68_p13 }
  0x21   : > { %s56_s16 = ssub.s32 %s1337_s13, %s1926_s22  ;;  %p1134_p3 = scmp.lt.s32.totalorder %s1341_s14, 2 }
  0x22   : > { %s1913_s15 = scalar_select %p1486_p9, 1, 0 }
  0x23   : > { %p59_p5 = scmp.eq.s32.totalorder %s56_s16, 0  ;;  %s133_s23 = sand.u32 1, %s1329_s11  }
  0x24   : > { %s1035_s24 = sshll.u32 %s133_s23, 3  ;;  %s1111_s27 = sshll.u32 %s1337_s13, 7 }
  0x25   : > { %s1495_s26 = scalar_select %p59_p5, %s1329_s11, %s61_s25  }
  0x26   : > { %s1501_s30 = scalar_lea.hbm %s1899_s1, %s1111_s27  ;;  %s137_s18 = scalar_lea.vmem [#allocation10], %s1035_s24 }
  0x27   : > { %s147_s3 = sshll.u32 %s137_s18, 4  ;;  %p1507_p2 = pnand %p1134_p3, %p1477_p6  ;;  %s1503_s3 = int_to_ptr.vmem [resolvable:$true] %s147_s3 }
  0x28   : > { %s134_s25 = scalar_lea.sflag [#allocation7], %s133_s23  ;;  %s1225_s5 = scalar_lea.hbm %s1501_s30, 128 }
  0x29   : > { %p1226_p11 = scmp.ne.s32.totalorder %s1501_s30, %s1225_s5  ;;  %p1227_p12 = pneg %p1507_p2 }
  0x2a   : > { %s1230_s16 = scalar_lea.hbm %s1899_s1, 256  ;;  %p1231_p7 = scmp.lt.u32.totalorder %s1501_s30, %s1899_s1 }
  0x2b   : > { %p1228_p13 = pnand %p1227_p12, %p1226_p11  ;;  %p1232_p10 = scmp.lt.u32.totalorder %s1230_s16, %s1225_s5 }
  0x2c   : > { %p1234_p3 = scmp.lt.u32.totalorder %s1225_s5, %s1501_s30 }
  0x2d   : > { %p1229_p0 = pneg %p1228_p13  ;;  %p1233_p6 = por %p1232_p10, %p1231_p7 }
  0x2f   : > { %p1235_p5 = por %p1234_p3, %p1233_p6 }
  0x31   : > { %p1236_p9 = pnand %p1235_p5, %p1229_p0 }
  0x33   : > { %1239 = shalt.err (!%p1236_p9)
}
  0x34   : > { %s1240_s23 = scalar_lea.vmem %s1503_s3, 128  ;;  %s1344_s27 = smov [#allocation10]  }
  0x35   : > { %p1241_p11 = scmp.ne.s32.totalorder %s1503_s3, %s1240_s23  ;;  %s1245_s28 = sshll.u32 %s1344_s27, 4  ;;  %s1246_s28 = int_to_ptr.vmem [resolvable:$false] %s1245_s28 }
  0x36   : > { %s1247_s29 = scalar_lea.vmem %s1246_s28, 256  ;;  %p1248_p1 = scmp.lt.s32.totalorder %s1503_s3, %s1246_s28 }
  0x37   : > { %p1243_p13 = pnand %p1241_p11, %p1227_p12  ;;  %p1249_p7 = scmp.lt.s32.totalorder %s1247_s29, %s1240_s23 }
  0x39   : > { %p1244_p4 = pneg %p1243_p13  ;;  %p1250_p10 = por %p1249_p7, %p1248_p1 }
  0x3b   : > { %p1251_p6 = pnand %p1250_p10, %p1244_p4 }
  0x3d   : > { %1254 = shalt.err (!%p1251_p6)
}
  0x3e   : > { %1128 = dma.hbm_to_vmem [thread:$0]  (!%p1507_p2), %s1501_s30, 128, %s1503_s3, %s134_s25  }
  0x3f   : > { %156 = sbr.rel (%p1432_p8) target bundleno = 520 (0x208), region = 28  ;;  %p1915_p9 = scmp.ne.s32.totalorder (!%p1432_p8), %s1905_s17, 0 }
  0x46   : > { %1308 = dma.done.wait (%p1915_p9), [#allocation9], 16  }
  0x47   : > { %1310 = vsyncadd (%p1915_p9), [#allocation9], 4294967280  ;;  %s1543_s18 = sand.u32 1, %s1325_s10   ;;  %p1916_p1 = scmp.ne.s32.totalorder %s1907_s19, 0 }
  0x48   : > { %s1040_s5 = sshll.u32 %s1543_s18, 3  ;;  %s163_s4 = scalar_lea.sflag [#allocation7], %s1543_s18 }
  0x49   : > { %s166_s6 = scalar_lea.vmem [#allocation10], %s1040_s5 }
  0x4a   : > { %1312 = dma.done.wait (%p1916_p1), %s163_s4, 128  }
  0x4b   : > { %1314 = vsyncadd (%p1916_p1), %s163_s4, 4294967168 }
  0x4c   : > { %171 = sfence }
  0x4d   : > { %v188_v0 = vld [vmem:[%s166_s6] sm:$0xff]  ;;  %vm192_vm0 = vcmask 1043456   ;;  %v1345_v4 = vmov 0.0   ;;  %v1346_v10 = vmov 1966171168   ;;  %v217_v12 = vlaneseq  ;;  %s1347_s17 = smov 80  }
  0x4e   : > { %v190_v1 = vcombine.high %v188_v0, %v188_v0  ;;  %v193_v2 = vsel %vm192_vm0, %v188_v0, -inf  ;;  %266 = vst [vmem:[#allocation3] sm:$0xff] %v1345_v4  ;;  %267 = vst [vmem:[#allocation3 + $0x8] sm:$0xff] %v1345_v4  ;;  %v215_v11 = vunpack.c.l.s4 %v1346_v10  ;;  %vm270_vm2 = vcmask 122880   ;;  %s1348_s19 = smov 112   ;;  %s1349_s21 = smov 64  }
  0x4f   : > { %v194_v3 = vrot.slane %v193_v2, 4  ;;  %268 = vst [vmem:[#allocation3 + $0x10] sm:$0xff] %v1345_v4  ;;  %v218_v18 = vshrl.u32 %v217_v12, 7  ;;  %vm231_vm1 = vcmp.lt.s32.totalorder %v217_v12, 256  ;;  %s1350_s30 = smov 96   ;;  %s1351_s3 = smov 32  }
  0x50   : > { %v200_v5 = vsel %vm192_vm0, %v190_v1, -inf  ;;  %v216_v17 = vunpack.c.0.s8 %v215_v11  ;;  %s1352_s25 = smov 48   ;;  %s1353_s7 = smov 16  }
  0x51   : > { %v195_v6 = vmax.f32 %v193_v2, %v194_v3  ;;  %v201_v7 = vrot.slane %v200_v5, 4  ;;  %s1354_s16 = smov 3   ;;  %s1355_s8 = smov 2  }
  0x52   : > { %v219_v22 = vsub.s32 %v216_v17, %v218_v18  ;;  %s1356_s24 = smov 1   ;;  %s1357_s23 = smov 127  }
  0x53   : > { %v196_v8 = vrot.slane %v195_v6, 2  ;;  %v202_v9 = vmax.f32 %v200_v5, %v201_v7  ;;  %s1358_s27 = smov 126   ;;  %s1359_s28 = smov 125  }
  0x54   : > { %s1583_s29 = sld [smem:[#allocation6]]  ;;  %s1585_s5 = sld [smem:[#allocation6 + $0x7]] }
  0x55   : > { %v197_v13 = vmax.f32 %v195_v6, %v196_v8  ;;  %v203_v14 = vrot.slane %v202_v9, 2  ;;  %s1587_s4 = sld [smem:[#allocation6 + $0xe]]  ;;  %s1589_s6 = sld [smem:[#allocation6 + $0x15]] }
  0x56   : > { %p1917_p8 = scmp.ne.s32.totalorder %s1913_s15, 0 }
  0x57   : > { %v198_v15 = vrot.slane %v197_v13, 1  ;;  %v204_v16 = vmax.f32 %v202_v9, %v203_v14 }
  0x59   : > { %v199_v19 = vmax.f32 %v197_v13, %v198_v15  ;;  %v205_v20 = vrot.slane %v204_v16, 1 }
  0x5a   : > { %v435_v50 = vstv %s1583_s29  ;;  %v442_v51 = vstv %s1585_s5  ;;  %s1639_s29 = sld [smem:[#allocation6 + $0x17]]  ;;  %s1642_s5 = sld [smem:[#allocation6 + $0x1e]] }
  0x5b   : > { %v206_v21 = vmax.f32 %v204_v16, %v205_v20  ;;  %v449_v52 = vstv %s1587_s4  ;;  %v456_v62 = vstv %s1589_s6  ;;  %s1645_s4 = sld [smem:[#allocation6 + $0x25]]  ;;  %s1656_s6 = sld [smem:[#allocation6 + $0x2c]] }
  0x5d   : > { %v213_v23 = vcombine.low %v199_v19, %v206_v21 }
  0x5f   : > { %v220_v24 = vrot.slane %v213_v23, %v219_v22 }
  0x61   : > { %v227_v25 = vrot.slane %v220_v24, %v219_v22 }
  0x63   : > { %233 = vst.msk [vmem:[#allocation2] sm:$0x3] %vm231_vm1, %v227_v25 }
  0x6a   : > { %v1044_v26 = vld [vmem:[#allocation2] ss:$0 sm:$0xff]  ;;  %v342_v28 = vld [vmem:[#allocation2 + $0x1] sm:$0x1] }
  0x6b   : > { %v269_v27 = vld [vmem:[#allocation2] sm:$0x1]  ;;  %298 = vrot.lane.b32.xlu1 %v1044_v26, %s1347_s17  ;;  %278 = vrot.lane.b32.xlu0 %v1044_v26, %s1348_s19  ;;  %343 = vst.msk [vmem:[#allocation3 + $0xb] sm:$0x1] %vm270_vm2, %v342_v28  ;;  %v1049_v29 = vld [vmem:[#allocation2 + $0x1] ss:$0 sm:$0xff] }
  0x6c   : > { %271 = vst.msk [vmem:[#allocation3 + $0x3] sm:$0x1] %vm270_vm2, %v269_v27 }
  0x6f   : > { %308 = vrot.lane.b32.xlu1 %v1044_v26, %s1349_s21  ;;  %288 = vrot.lane.b32.xlu0 %v1044_v26, %s1350_s30 }
  0x73   : > { %328 = vrot.lane.b32.xlu1 %v1044_v26, %s1351_s3  ;;  %318 = vrot.lane.b32.xlu0 %v1044_v26, %s1352_s25 }
  0x77   : > { %350 = vrot.lane.b32.xlu1 %v1049_v29, %s1348_s19  ;;  %338 = vrot.lane.b32.xlu0 %v1044_v26, %s1353_s7  ;;  %s1595_s19 = sld [smem:[#allocation6 + $0x23]] }
  0x7b   : > { %370 = vrot.lane.b32.xlu1 %v1049_v29, %s1347_s17  ;;  %360 = vrot.lane.b32.xlu0 %v1049_v29, %s1350_s30  ;;  %s1591_s17 = sld [smem:[#allocation6 + $0x1c]]  ;;  %s1601_s30 = sld [smem:[#allocation6 + $0x1]] }
  0x7d   : > { %v470_v9 = vstv %s1595_s19  ;;  %s1662_s19 = sld [smem:[#allocation6 + $0xa]] }
  0x7f   : > { %390 = vrot.lane.b32.xlu1 %v1049_v29, %s1352_s25  ;;  %380 = vrot.lane.b32.xlu0 %v1049_v29, %s1349_s21  ;;  %s1598_s21 = sld [smem:[#allocation6 + $0x2a]]  ;;  %s1607_s25 = sld [smem:[#allocation6 + $0xf]] }
  0x81   : > { %v463_v1 = vstv %s1591_s17  ;;  %v507_v22 = vstv %s1601_s30  ;;  %s1659_s17 = sld [smem:[#allocation6 + $0x3]]  ;;  %s1671_s30 = sld [smem:[#allocation6 + $0x18]] }
  0x83   : > { %410 = vrot.lane.b32.xlu1 %v1049_v29, %s1353_s7  ;;  %400 = vrot.lane.b32.xlu0 %v1049_v29, %s1351_s3  ;;  %s1604_s3 = sld [smem:[#allocation6 + $0x8]]  ;;  %s1610_s7 = sld [smem:[#allocation6 + $0x16]] }
  0x85   : > { %v477_v17 = vstv %s1598_s21  ;;  %s1668_s21 = sld [smem:[#allocation6 + $0x11]] }
  0xdd   : > { %v299_v30 = vpop.permute.xlu1 %298  ;;  %v279_v31 = vpop.permute.xlu0 %278 }
  0xde   : > { %301 = vst.msk [vmem:[#allocation3 + $0x6] sm:$0x1] %vm270_vm2, %v299_v30  ;;  %281 = vst.msk [vmem:[#allocation3 + $0x4] sm:$0x1] %vm270_vm2, %v279_v31  ;;  %v514_v30 = vstv %s1604_s3  ;;  %s1687_s3 = sld [smem:[#allocation6 + $0x1f]] }
  0xe1   : > { %v309_v32 = vpop.permute.xlu1 %308  ;;  %v289_v33 = vpop.permute.xlu0 %288 }
  0xe2   : > { %311 = vst.msk [vmem:[#allocation3 + $0x7] sm:$0x1] %vm270_vm2, %v309_v32  ;;  %291 = vst.msk [vmem:[#allocation3 + $0x5] sm:$0x1] %vm270_vm2, %v289_v33 }
  0xe5   : > { %v329_v34 = vpop.permute.xlu1 %328  ;;  %v319_v35 = vpop.permute.xlu0 %318 }
  0xe6   : > { %331 = vst.msk [vmem:[#allocation3 + $0x9] sm:$0x1] %vm270_vm2, %v329_v34  ;;  %321 = vst.msk [vmem:[#allocation3 + $0x8] sm:$0x1] %vm270_vm2, %v319_v35  ;;  %v521_v35 = vstv %s1607_s25  ;;  %s1704_s25 = sld [smem:[#allocation6 + $0x26]] }
  0xe9   : > { %v1559_v36 = vld [vmem:[#allocation3] sm:$0xff]  ;;  %v351_v37 = vpop.permute.xlu1 %350  ;;  %v339_v38 = vpop.permute.xlu0 %338 }
  0xea   : > { %353 = vst.msk [vmem:[#allocation3 + $0xc] sm:$0x1] %vm270_vm2, %v351_v37  ;;  %341 = vst.msk [vmem:[#allocation3 + $0xa] sm:$0x1] %vm270_vm2, %v339_v38  ;;  %417 = vrot.lane.b32.xlu0 %v1559_v36, %s1354_s16 }
  0xed   : > { %v371_v39 = vpop.permute.xlu1 %370  ;;  %v361_v40 = vpop.permute.xlu0 %360 }
  0xee   : > { %373 = vst.msk [vmem:[#allocation3 + $0xe] sm:$0x1] %vm270_vm2, %v371_v39  ;;  %363 = vst.msk [vmem:[#allocation3 + $0xd] sm:$0x1] %vm270_vm2, %v361_v40 }
  0xf1   : > { %v391_v41 = vpop.permute.xlu1 %390  ;;  %v381_v42 = vpop.permute.xlu0 %380 }
  0xf2   : > { %393 = vst.msk [vmem:[#allocation3 + $0x10] sm:$0x1] %vm270_vm2, %v391_v41  ;;  %383 = vst.msk [vmem:[#allocation3 + $0xf] sm:$0x1] %vm270_vm2, %v381_v42 }
  0xf5   : > { %v411_v43 = vpop.permute.xlu1 %410  ;;  %v401_v44 = vpop.permute.xlu0 %400 }
  0xf6   : > { %413 = vst.msk [vmem:[#allocation3 + $0x12] sm:$0x1] %vm270_vm2, %v411_v43  ;;  %403 = vst.msk [vmem:[#allocation3 + $0x11] sm:$0x1] %vm270_vm2, %v401_v44 }
  0xf9   : > { %v1570_v45 = vld [vmem:[#allocation3 + $0x8] sm:$0xff] }
  0xfa   : > { %419 = vrot.lane.b32.xlu1 %v1570_v45, %s1354_s16 }
  0xfd   : > { %v416_v46 = vld [vmem:[#allocation3 + $0x10] sm:$0xff] }
  0xfe   : > { %487 = vrot.lane.b32.xlu1 %v1559_v36, %s1355_s8  ;;  %421 = vrot.lane.b32.xlu0 %v416_v46, %s1354_s16  ;;  %s1613_s16 = sld [smem:[#allocation6 + $0x1d]] }
 0x102   : > { %491 = vrot.lane.b32.xlu1 %v416_v46, %s1355_s8  ;;  %489 = vrot.lane.b32.xlu0 %v1570_v45, %s1355_s8  ;;  %s1618_s8 = sld [smem:[#allocation6 + $0x24]] }
 0x106   : > { %561 = vrot.lane.b32.xlu1 %v1570_v45, %s1356_s24  ;;  %559 = vrot.lane.b32.xlu0 %v1559_v36, %s1356_s24 }
 0x10a   : > { %691 = vrot.lane.b32.xlu1 %v1559_v36, %s1357_s23  ;;  %563 = vrot.lane.b32.xlu0 %v416_v46, %s1356_s24  ;;  %s1621_s24 = sld [smem:[#allocation6 + $0x2b]] }
 0x10e   : > { %695 = vrot.lane.b32.xlu1 %v416_v46, %s1357_s23  ;;  %693 = vrot.lane.b32.xlu0 %v1570_v45, %s1357_s23  ;;  %s1626_s23 = sld [smem:[#allocation6 + $0x2]] }
 0x112   : > { %765 = vrot.lane.b32.xlu1 %v1570_v45, %s1358_s27  ;;  %763 = vrot.lane.b32.xlu0 %v1559_v36, %s1358_s27 }
 0x116   : > { %835 = vrot.lane.b32.xlu1 %v1559_v36, %s1359_s28  ;;  %767 = vrot.lane.b32.xlu0 %v416_v46, %s1358_s27  ;;  %s1630_s27 = sld [smem:[#allocation6 + $0x9]] }
 0x11a   : > { %839 = vrot.lane.b32.xlu1 %v416_v46, %s1359_s28  ;;  %837 = vrot.lane.b32.xlu0 %v1570_v45, %s1359_s28  ;;  %s1634_s28 = sld [smem:[#allocation6 + $0x10]] }
 0x15c   : > { %v418_v47 = vpop.permute.xlu0 %417 }
 0x15d   : > { %423 = vst [vmem:[#allocation4] sm:$0xff] %v418_v47  ;;  %v436_v57 = vmul.f32 %v435_v50, %v418_v47 }
 0x16c   : > { %v420_v48 = vpop.permute.xlu1 %419 }
 0x16d   : > { %424 = vst [vmem:[#allocation4 + $0x8] sm:$0xff] %v420_v48  ;;  %v437_v8 = vmul.f32 %v435_v50, %v420_v48  ;;  %v528_v48 = vstv %s1610_s7  ;;  %s1710_s7 = sld [smem:[#allocation6 + $0x2d]] }
 0x170   : > { %v422_v49 = vpop.permute.xlu0 %421  ;;  %v488_v56 = vpop.permute.xlu1 %487 }
 0x171   : > { %425 = vst [vmem:[#allocation4 + $0x10] sm:$0xff] %v422_v49  ;;  %v508_v32 = vmul.f32 %v507_v22, %v488_v56 }
 0x174   : > { %v440_v53 = vld [vmem:[#allocation4 + $0x1] sm:$0xff]  ;;  %v490_v7 = vpop.permute.xlu0 %489  ;;  %v492_v14 = vpop.permute.xlu1 %491 }
 0x175   : > { %v447_v54 = vld [vmem:[#allocation4 + $0x2] sm:$0xff]  ;;  %v443_v58 = vmul.f32 %v442_v51, %v440_v53 }
 0x176   : > { %v454_v55 = vld [vmem:[#allocation4 + $0x3] sm:$0xff]  ;;  %v450_v0 = vmul.f32 %v449_v52, %v447_v54 }
 0x177   : > { %v461_v59 = vld [vmem:[#allocation4 + $0x4] sm:$0xff]  ;;  %v445_v63 = vadd.f32 %v443_v58, %v436_v57  ;;  %v457_v2 = vmul.f32 %v456_v62, %v454_v55 }
 0x178   : > { %v468_v60 = vld [vmem:[#allocation4 + $0x5] sm:$0xff]  ;;  %v469_v12 = vld [vmem:[#allocation4 + $0xd] sm:$0xff]  ;;  %v464_v16 = vmul.f32 %v463_v1, %v461_v59  ;;  %v1615_v27 = vpop.permute.xlu0 %559 }
 0x179   : > { %v475_v61 = vld [vmem:[#allocation4 + $0x6] sm:$0xff]  ;;  %v452_v3 = vadd.f32 %v450_v0, %v445_v63  ;;  %v476_v13 = vld [vmem:[#allocation4 + $0xe] sm:$0xff]  ;;  %v471_v21 = vmul.f32 %v470_v9, %v468_v60  ;;  %v472_v34 = vmul.f32 %v470_v9, %v469_v12  ;;  %v509_v60 = vmul.f32 %v507_v22, %v490_v7 }
 0x17a   : > { %493 = vst [vmem:[#allocation4] sm:$0xff] %v488_v56  ;;  %v441_v4 = vld [vmem:[#allocation4 + $0x9] sm:$0xff]  ;;  %v478_v26 = vmul.f32 %v477_v17, %v475_v61  ;;  %v479_v47 = vmul.f32 %v477_v17, %v476_v13  ;;  %v535_v61 = vstv %s1613_s16  ;;  %v579_v13 = vstv %s1626_s23  ;;  %s1717_s16 = sld [smem:[#allocation6 + $0x4]]  ;;  %s1747_s23 = sld [smem:[#allocation6 + $0x19]] }
 0x17b   : > { %v448_v5 = vld [vmem:[#allocation4 + $0xa] sm:$0xff]  ;;  %v444_v10 = vmul.f32 %v442_v51, %v441_v4  ;;  %v459_v15 = vadd.f32 %v457_v2, %v452_v3  ;;  %v542_v2 = vstv %s1618_s8  ;;  %s1721_s8 = sld [smem:[#allocation6 + $0xb]] }
 0x17c   : > { %v455_v6 = vld [vmem:[#allocation4 + $0xb] sm:$0xff]  ;;  %v451_v19 = vmul.f32 %v449_v52, %v448_v5  ;;  %v1624_v52 = vpop.permute.xlu1 %561  ;;  %v564_v58 = vpop.permute.xlu0 %563 }
 0x17d   : > { %v462_v11 = vld [vmem:[#allocation4 + $0xc] sm:$0xff]  ;;  %v446_v18 = vadd.f32 %v444_v10, %v437_v8  ;;  %v466_v20 = vadd.f32 %v464_v16, %v459_v15  ;;  %v458_v24 = vmul.f32 %v456_v62, %v455_v6 }
 0x17e   : > { %495 = vst [vmem:[#allocation4 + $0x10] sm:$0xff] %v492_v14  ;;  %494 = vst [vmem:[#allocation4 + $0x8] sm:$0xff] %v490_v7  ;;  %v465_v29 = vmul.f32 %v463_v1, %v462_v11  ;;  %v549_v7 = vstv %s1621_s24  ;;  %s1730_s24 = sld [smem:[#allocation6 + $0x12]] }
 0x17f   : > { %v453_v23 = vadd.f32 %v451_v19, %v446_v18  ;;  %v473_v25 = vadd.f32 %v471_v21, %v466_v20  ;;  %v586_v21 = vstv %s1630_s27  ;;  %s1757_s27 = sld [smem:[#allocation6 + $0x20]] }
 0x180   : > { %v1637_v8 = vpop.permute.xlu1 %691 }
 0x181   : > { %v460_v28 = vadd.f32 %v458_v24, %v453_v23  ;;  %v480_v31 = vadd.f32 %v478_v26, %v473_v25  ;;  %v580_v26 = vmul.f32 %v579_v13, %v1615_v27 }
 0x183   : > { %v467_v33 = vadd.f32 %v465_v29, %v460_v28  ;;  %v510_v40 = vadd.f32 %v508_v32, %v480_v31  ;;  %v1649_v31 = vpop.permute.xlu0 %693 }
 0x185   : > { %v512_v37 = vld [vmem:[#allocation4 + $0x1] sm:$0xff]  ;;  %v513_v38 = vld [vmem:[#allocation4 + $0x9] sm:$0xff]  ;;  %v474_v46 = vadd.f32 %v472_v34, %v467_v33  ;;  %v593_v34 = vstv %s1634_s28  ;;  %s1760_s28 = sld [smem:[#allocation6 + $0x27]] }
 0x186   : > { %v519_v39 = vld [vmem:[#allocation4 + $0x2] sm:$0xff]  ;;  %v515_v41 = vmul.f32 %v514_v30, %v512_v37  ;;  %v520_v42 = vld [vmem:[#allocation4 + $0xa] sm:$0xff]  ;;  %v516_v1 = vmul.f32 %v514_v30, %v513_v38 }
 0x187   : > { %v526_v43 = vld [vmem:[#allocation4 + $0x3] sm:$0xff]  ;;  %v527_v44 = vld [vmem:[#allocation4 + $0xb] sm:$0xff]  ;;  %v522_v54 = vmul.f32 %v521_v35, %v519_v39  ;;  %v481_v59 = vadd.f32 %v479_v47, %v474_v46  ;;  %v523_v6 = vmul.f32 %v521_v35, %v520_v42  ;;  %v696_v39 = vpop.permute.xlu1 %695 }
 0x188   : > { %v533_v49 = vld [vmem:[#allocation4 + $0x4] sm:$0xff]  ;;  %v534_v50 = vld [vmem:[#allocation4 + $0xc] sm:$0xff]  ;;  %v517_v53 = vadd.f32 %v515_v41, %v510_v40  ;;  %v529_v63 = vmul.f32 %v528_v48, %v526_v43  ;;  %v530_v12 = vmul.f32 %v528_v48, %v527_v44  ;;  %v600_v43 = vstv %s1639_s29  ;;  %s1764_s29 = sld [smem:[#allocation6 + $0x2e]] }
 0x189   : > { %v540_v51 = vld [vmem:[#allocation4 + $0x5] sm:$0xff]  ;;  %v541_v55 = vld [vmem:[#allocation4 + $0xd] sm:$0xff]  ;;  %v511_v0 = vadd.f32 %v509_v60, %v481_v59  ;;  %v536_v4 = vmul.f32 %v535_v61, %v533_v49  ;;  %v537_v20 = vmul.f32 %v535_v61, %v534_v50  ;;  %v581_v48 = vmul.f32 %v579_v13, %v1624_v52  ;;  %v1666_v50 = vpop.permute.xlu0 %763 }
 0x18a   : > { %v547_v56 = vld [vmem:[#allocation4 + $0x6] sm:$0xff]  ;;  %v548_v57 = vld [vmem:[#allocation4 + $0xe] sm:$0xff]  ;;  %v524_v62 = vadd.f32 %v522_v54, %v517_v53  ;;  %v543_v10 = vmul.f32 %v542_v2, %v540_v51  ;;  %v544_v33 = vmul.f32 %v542_v2, %v541_v55  ;;  %v607_v49 = vstv %s1642_s5  ;;  %s1769_s5 = sld [smem:[#allocation6 + $0x5]] }
 0x18b   : > { %566 = vst [vmem:[#allocation4 + $0x8] sm:$0xff] %v1624_v52  ;;  %565 = vst [vmem:[#allocation4] sm:$0xff] %v1615_v27  ;;  %v518_v5 = vadd.f32 %v516_v1, %v511_v0  ;;  %v550_v15 = vmul.f32 %v549_v7, %v547_v56  ;;  %v551_v42 = vmul.f32 %v549_v7, %v548_v57  ;;  %v614_v56 = vstv %s1645_s4  ;;  %s1774_s4 = sld [smem:[#allocation6 + $0xc]] }
 0x18c   : > { %567 = vst [vmem:[#allocation4 + $0x10] sm:$0xff] %v564_v58  ;;  %v531_v3 = vadd.f32 %v529_v63, %v524_v62  ;;  %v621_v61 = vstv %s1656_s6  ;;  %s1779_s6 = sld [smem:[#allocation6 + $0x13]] }
 0x18d   : > { %v525_v11 = vadd.f32 %v523_v6, %v518_v5  ;;  %v639_v5 = vstv %s1659_s17  ;;  %v1689_v6 = vpop.permute.xlu1 %765  ;;  %v768_v13 = vpop.permute.xlu0 %767  ;;  %s1784_s17 = sld [smem:[#allocation6 + $0x1a]] }
 0x18e   : > { %v538_v9 = vadd.f32 %v536_v4, %v531_v3 }
 0x18f   : > { %v532_v19 = vadd.f32 %v530_v12, %v525_v11 }
 0x190   : > { %v545_v14 = vadd.f32 %v543_v10, %v538_v9 }
 0x191   : > { %v539_v32 = vadd.f32 %v537_v20, %v532_v19  ;;  %v646_v19 = vstv %s1662_s19  ;;  %v644_v20 = vld [vmem:[#allocation3 + $0x1] sm:$0xff]  ;;  %s1788_s19 = sld [smem:[#allocation6 + $0x21]] }
 0x192   : > { %v584_v16 = vld [vmem:[#allocation4 + $0x1] sm:$0xff]  ;;  %v552_v25 = vadd.f32 %v550_v15, %v545_v14 }
 0x193   : > { %v591_v17 = vld [vmem:[#allocation4 + $0x2] sm:$0xff]  ;;  %v592_v29 = vld [vmem:[#allocation4 + $0xa] sm:$0xff]  ;;  %v587_v40 = vmul.f32 %v586_v21, %v584_v16  ;;  %v546_v41 = vadd.f32 %v544_v33, %v539_v32  ;;  %v660_v33 = vstv %s1671_s30  ;;  %s1798_s30 = sld [smem:[#allocation6 + $0x2f]] }
 0x194   : > { %v598_v18 = vld [vmem:[#allocation4 + $0x3] sm:$0xff]  ;;  %v599_v30 = vld [vmem:[#allocation4 + $0xb] sm:$0xff]  ;;  %v582_v27 = vadd.f32 %v580_v26, %v552_v25  ;;  %v594_v46 = vmul.f32 %v593_v34, %v591_v17  ;;  %v595_v59 = vmul.f32 %v593_v34, %v592_v29  ;;  %v653_v25 = vstv %s1668_s21  ;;  %s1793_s21 = sld [smem:[#allocation6 + $0x28]] }
 0x195   : > { %v605_v22 = vld [vmem:[#allocation4 + $0x4] sm:$0xff]  ;;  %v606_v35 = vld [vmem:[#allocation4 + $0xc] sm:$0xff]  ;;  %v553_v47 = vadd.f32 %v551_v42, %v546_v41  ;;  %v601_v53 = vmul.f32 %v600_v43, %v598_v18  ;;  %v602_v9 = vmul.f32 %v600_v43, %v599_v30  ;;  %v647_v30 = vmul.f32 %v646_v19, %v644_v20 }
 0x196   : > { %v612_v23 = vld [vmem:[#allocation4 + $0x5] sm:$0xff]  ;;  %v1652_v37 = vld [vmem:[#allocation4 + $0xd] sm:$0xff]  ;;  %v589_v44 = vadd.f32 %v587_v40, %v582_v27  ;;  %v608_v58 = vmul.f32 %v607_v49, %v605_v22  ;;  %v609_v22 = vmul.f32 %v607_v49, %v606_v35  ;;  %v1714_v35 = vpop.permute.xlu1 %835  ;;  %v667_v42 = vstv %s1687_s3  ;;  %s1804_s3 = sld [smem:[#allocation6 + $0x6]] }
 0x197   : > { %v619_v24 = vld [vmem:[#allocation4 + $0x6] sm:$0xff]  ;;  %v1654_v38 = vld [vmem:[#allocation4 + $0xe] sm:$0xff]  ;;  %v583_v54 = vadd.f32 %v581_v48, %v553_v47  ;;  %v615_v1 = vmul.f32 %v614_v56, %v612_v23  ;;  %v640_v23 = vmul.f32 %v639_v5, %v1559_v36  ;;  %v616_v29 = vmul.f32 %v614_v56, %v1652_v37 }
 0x198   : > { %697 = vst [vmem:[#allocation4] sm:$0xff] %v1637_v8  ;;  %v585_v28 = vld [vmem:[#allocation4 + $0x9] sm:$0xff]  ;;  %v596_v51 = vadd.f32 %v594_v46, %v589_v44  ;;  %v622_v15 = vmul.f32 %v621_v61, %v619_v24  ;;  %v623_v27 = vmul.f32 %v621_v61, %v1654_v38  ;;  %v645_v40 = vld [vmem:[#allocation3 + $0x9] sm:$0xff]  ;;  %v641_v37 = vmul.f32 %v639_v5, %v1570_v45 }
 0x199   : > { %699 = vst [vmem:[#allocation4 + $0x10] sm:$0xff] %v696_v39  ;;  %698 = vst [vmem:[#allocation4 + $0x8] sm:$0xff] %v1649_v31  ;;  %v588_v55 = vmul.f32 %v586_v21, %v585_v28  ;;  %v651_v26 = vld [vmem:[#allocation3 + $0x2] sm:$0xff]  ;;  %v652_v46 = vld [vmem:[#allocation3 + $0xa] sm:$0xff] }
 0x19a   : > { %v603_v57 = vadd.f32 %v601_v53, %v596_v51  ;;  %v658_v34 = vld [vmem:[#allocation3 + $0x3] sm:$0xff]  ;;  %v654_v36 = vmul.f32 %v653_v25, %v651_v26  ;;  %v659_v49 = vld [vmem:[#allocation3 + $0xb] sm:$0xff] }
 0x19b   : > { %v590_v60 = vadd.f32 %v588_v55, %v583_v54  ;;  %v665_v43 = vld [vmem:[#allocation3 + $0x4] sm:$0xff]  ;;  %v661_v48 = vmul.f32 %v660_v33, %v658_v34  ;;  %v674_v55 = vstv %s1704_s25  ;;  %s1809_s25 = sld [smem:[#allocation6 + $0xd]] }
 0x19c   : > { %v610_v0 = vadd.f32 %v608_v58, %v603_v57  ;;  %v672_v44 = vld [vmem:[#allocation3 + $0x5] sm:$0xff]  ;;  %v648_v57 = vmul.f32 %v646_v19, %v645_v40  ;;  %v668_v61 = vmul.f32 %v667_v42, %v665_v43  ;;  %v680_v40 = vld [vmem:[#allocation3 + $0xe] sm:$0xff] }
 0x19d   : > { %v597_v7 = vadd.f32 %v595_v59, %v590_v60  ;;  %v679_v56 = vld [vmem:[#allocation3 + $0x6] sm:$0xff] }
 0x19e   : > { %v617_v14 = vadd.f32 %v615_v1, %v610_v0 }
 0x19f   : > { %v604_v21 = vadd.f32 %v602_v9, %v597_v7  ;;  %v681_v9 = vstv %s1710_s7  ;;  %s1814_s7 = sld [smem:[#allocation6 + $0x14]] }
 0x1a0   : > { %v1674_v62 = vld [vmem:[#allocation4 + $0x1] sm:$0xff]  ;;  %v1676_v52 = vld [vmem:[#allocation4 + $0x9] sm:$0xff]  ;;  %v624_v24 = vadd.f32 %v622_v15, %v617_v14  ;;  %v840_v14 = vpop.permute.xlu1 %839  ;;  %v1745_v15 = vpop.permute.xlu0 %837 }
 0x1a1   : > { %v1678_v63 = vld [vmem:[#allocation4 + $0x2] sm:$0xff]  ;;  %v1680_v2 = vld [vmem:[#allocation4 + $0xa] sm:$0xff]  ;;  %v611_v28 = vadd.f32 %v609_v22, %v604_v21 }
 0x1a2   : > { %v1682_v3 = vld [vmem:[#allocation4 + $0x3] sm:$0xff]  ;;  %v1684_v4 = vld [vmem:[#allocation4 + $0xb] sm:$0xff]  ;;  %v642_v32 = vadd.f32 %v640_v23, %v624_v24  ;;  %v675_v23 = vmul.f32 %v674_v55, %v672_v44  ;;  %v666_v24 = vld [vmem:[#allocation3 + $0xc] sm:$0xff] }
 0x1a3   : > { %v1691_v10 = vld [vmem:[#allocation4 + $0x4] sm:$0xff]  ;;  %v1693_v11 = vld [vmem:[#allocation4 + $0xc] sm:$0xff]  ;;  %v618_v39 = vadd.f32 %v616_v29, %v611_v28  ;;  %v711_v29 = vstv %s1717_s16  ;;  %s1819_s16 = sld [smem:[#allocation6 + $0x1b]] }
 0x1a4   : > { %v1695_v12 = vld [vmem:[#allocation4 + $0x5] sm:$0xff]  ;;  %v1697_v16 = vld [vmem:[#allocation4 + $0xd] sm:$0xff]  ;;  %v649_v41 = vadd.f32 %v647_v30, %v642_v32  ;;  %v682_v30 = vmul.f32 %v681_v9, %v679_v56  ;;  %v673_v32 = vld [vmem:[#allocation3 + $0xd] sm:$0xff]  ;;  %v712_v43 = vmul.f32 %v711_v29, %v1637_v8  ;;  %v713_v8 = vmul.f32 %v711_v29, %v1649_v31 }
 0x1a5   : > { %v1699_v17 = vld [vmem:[#allocation4 + $0x6] sm:$0xff]  ;;  %v1701_v18 = vld [vmem:[#allocation4 + $0xe] sm:$0xff]  ;;  %v625_v47 = vadd.f32 %v623_v27, %v618_v39  ;;  %v669_v39 = vmul.f32 %v667_v42, %v666_v24  ;;  %v790_v29 = vstv %s1774_s4 }
 0x1a6   : > { %769 = vst [vmem:[#allocation4] sm:$0xff] %v1666_v50  ;;  %770 = vst [vmem:[#allocation4 + $0x8] sm:$0xff] %v1689_v6  ;;  %v656_v51 = vadd.f32 %v654_v36, %v649_v41  ;;  %v718_v36 = vstv %s1721_s8  ;;  %s1823_s8 = sld [smem:[#allocation6 + $0x22]] }
 0x1a7   : > { %771 = vst [vmem:[#allocation4 + $0x10] sm:$0xff] %v768_v13  ;;  %v643_v58 = vadd.f32 %v641_v37, %v625_v47  ;;  %v655_v13 = vmul.f32 %v653_v25, %v652_v46  ;;  %v662_v25 = vmul.f32 %v660_v33, %v659_v49  ;;  %v676_v33 = vmul.f32 %v674_v55, %v673_v32 }
 0x1a8   : > { %v663_v0 = vadd.f32 %v661_v48, %v656_v51  ;;  %v725_v37 = vstv %s1730_s24  ;;  %v719_v47 = vmul.f32 %v718_v36, %v1674_v62  ;;  %v683_v48 = vmul.f32 %v681_v9, %v680_v40  ;;  %s1828_s24 = sld [smem:[#allocation6 + $0x29]] }
 0x1a9   : > { %v650_v19 = vadd.f32 %v648_v57, %v643_v58  ;;  %v732_v49 = vstv %s1747_s23  ;;  %v726_v56 = vmul.f32 %v725_v37, %v1678_v63  ;;  %v739_v55 = vstv %s1757_s27  ;;  %s1833_s23 = sld [smem:[#allocation6 + $0x30]]  ;;  %s1041_s27 = sshll.u32 %s1543_s18, 4 }
 0x1aa   : > { %v670_v26 = vadd.f32 %v668_v61, %v663_v0  ;;  %v733_v61 = vmul.f32 %v732_v49, %v1682_v3  ;;  %v720_v0 = vmul.f32 %v718_v36, %v1676_v52  ;;  %v746_v9 = vstv %s1760_s28  ;;  %s1112_s28 = sshll.u32 %s1333_s12, 8  ;;  %s1360_s12 = smov [#allocation11]  }
 0x1ab   : > { %v657_v28 = vadd.f32 %v655_v13, %v650_v19  ;;  %v727_v31 = vmul.f32 %v725_v37, %v1680_v2  ;;  %v753_v19 = vstv %s1764_s29  ;;  %v747_v3 = vmul.f32 %v746_v9, %v1695_v12  ;;  %s187_s29 = scalar_lea.vmem [#allocation11], %s1041_s27 }
 0x1ac   : > { %v677_v34 = vadd.f32 %v675_v23, %v670_v26  ;;  %v734_v52 = vmul.f32 %v732_v49, %v1684_v4  ;;  %v783_v26 = vstv %s1769_s5  ;;  %v741_v2 = vmul.f32 %v739_v55, %v1693_v11  ;;  %s934_s5 = sshll.u32 %s187_s29, 4  ;;  %s1849_s5 = int_to_ptr.vmem [resolvable:$true] %s934_s5 }
 0x1ad   : > { %v1723_v53 = vld [vmem:[#allocation4 + $0x1] sm:$0xff]  ;;  %v664_v27 = vadd.f32 %v662_v25, %v657_v28  ;;  %v784_v12 = vmul.f32 %v783_v26, %v1666_v50  ;;  %v748_v4 = vmul.f32 %v746_v9, %v1697_v16  ;;  %v755_v11 = vmul.f32 %v753_v19, %v1701_v18 }
 0x1ae   : > { %v1725_v38 = vld [vmem:[#allocation4 + $0x9] sm:$0xff]  ;;  %v684_v41 = vadd.f32 %v682_v30, %v677_v34  ;;  %v797_v34 = vstv %s1779_s6  ;;  %v804_v36 = vstv %s1784_s17  ;;  %v785_v16 = vmul.f32 %v783_v26, %v1689_v6  ;;  %s1847_s17 = scalar_lea.hbm %s1900_s2, %s1112_s28 }
 0x1af   : > { %v1727_v54 = vld [vmem:[#allocation4 + $0x2] sm:$0xff]  ;;  %v1732_v45 = vld [vmem:[#allocation4 + $0xa] sm:$0xff]  ;;  %v671_v44 = vadd.f32 %v669_v39, %v664_v27  ;;  %v792_v18 = vmul.f32 %v790_v29, %v1725_v38  ;;  %v818_v37 = vstv %s1793_s21  ;;  %v855_v38 = vstv %s1804_s3  ;;  %s1255_s21 = scalar_lea.vmem %s1849_s5, 256 }
 0x1b0   : > { %v1734_v59 = vld [vmem:[#allocation4 + $0x3] sm:$0xff]  ;;  %v1736_v60 = vld [vmem:[#allocation4 + $0xb] sm:$0xff]  ;;  %v714_v46 = vadd.f32 %v712_v43, %v684_v41  ;;  %v798_v50 = vmul.f32 %v797_v34, %v1727_v54  ;;  %v811_v43 = vstv %s1788_s19  ;;  %v799_v6 = vmul.f32 %v797_v34, %v1732_v45  ;;  %s921_s19 = scalar_lea.sflag [#allocation8], %s1543_s18  ;;  %p1256_p4 = scmp.ne.s32.totalorder %s1849_s5, %s1255_s21 }
 0x1b1   : > { %v1738_v1 = vld [vmem:[#allocation4 + $0x4] sm:$0xff]  ;;  %v1740_v5 = vld [vmem:[#allocation4 + $0xc] sm:$0xff]  ;;  %v678_v42 = vadd.f32 %v676_v33, %v671_v44  ;;  %v805_v44 = vmul.f32 %v804_v36, %v1734_v59 }
 0x1b2   : > { %v1742_v7 = vld [vmem:[#allocation4 + $0x5] sm:$0xff]  ;;  %v1749_v20 = vld [vmem:[#allocation4 + $0xd] sm:$0xff]  ;;  %v721_v51 = vadd.f32 %v719_v47, %v714_v46  ;;  %v812_v47 = vmul.f32 %v811_v43, %v1738_v1  ;;  %p1257_p2 = pnand %p1256_p4, %p1917_p8 }
 0x1b3   : > { %v1751_v21 = vld [vmem:[#allocation4 + $0x6] sm:$0xff]  ;;  %v1753_v22 = vld [vmem:[#allocation4 + $0xe] sm:$0xff]  ;;  %v685_v57 = vadd.f32 %v683_v48, %v678_v42  ;;  %v825_v48 = vstv %s1798_s30  ;;  %v819_v59 = vmul.f32 %v818_v37, %v1742_v7  ;;  %v856_v7 = vmul.f32 %v855_v38, %v1714_v35  ;;  %s1259_s30 = sshll.u32 %s1360_s12, 4  ;;  %s1260_s30 = int_to_ptr.vmem [resolvable:$false] %s1259_s30 }
 0x1b4   : > { %841 = vst [vmem:[#allocation4] sm:$0xff] %v1714_v35  ;;  %842 = vst [vmem:[#allocation4 + $0x8] sm:$0xff] %v1745_v15  ;;  %v728_v58 = vadd.f32 %v726_v56, %v721_v51  ;;  %v806_v51 = vmul.f32 %v804_v36, %v1736_v60  ;;  %v826_v1 = vmul.f32 %v825_v48, %v1751_v21  ;;  %p1258_p12 = pneg %p1257_p2  ;;  %s1261_s3 = scalar_lea.vmem %s1260_s30, 512 }
 0x1b5   : > { %843 = vst [vmem:[#allocation4 + $0x10] sm:$0xff] %v840_v14  ;;  %v715_v62 = vadd.f32 %v713_v8, %v685_v57  ;;  %v740_v14 = vmul.f32 %v739_v55, %v1691_v10  ;;  %v754_v10 = vmul.f32 %v753_v19, %v1699_v17  ;;  %v791_v17 = vmul.f32 %v790_v29, %v1723_v53  ;;  %p1262_p0 = scmp.lt.s32.totalorder %s1849_s5, %s1260_s30  ;;  %p1263_p3 = scmp.lt.s32.totalorder %s1261_s3, %s1255_s21 }
 0x1b6   : > { %v735_v13 = vadd.f32 %v733_v61, %v728_v58  ;;  %v813_v8 = vmul.f32 %v811_v43, %v1740_v5  ;;  %v862_v55 = vstv %s1809_s25  ;;  %v820_v60 = vmul.f32 %v818_v37, %v1749_v20 }
 0x1b7   : > { %v722_v63 = vadd.f32 %v720_v0, %v715_v62  ;;  %v869_v0 = vstv %s1814_s7  ;;  %v827_v5 = vmul.f32 %v825_v48, %v1753_v22  ;;  %v890_v29 = vstv %s1828_s24  ;;  %p1264_p5 = por %p1263_p3, %p1262_p0 }
 0x1b8   : > { %v742_v23 = vadd.f32 %v740_v14, %v735_v13 }
 0x1b9   : > { %v729_v24 = vadd.f32 %v727_v31, %v722_v63  ;;  %v876_v63 = vstv %s1819_s16  ;;  %p1265_p11 = pnand %p1264_p5, %p1258_p12 }
 0x1ba   : > { %v749_v25 = vadd.f32 %v747_v3, %v742_v23  ;;  %v857_v3 = vmul.f32 %v855_v38, %v1745_v15 }
 0x1bb   : > { %v736_v28 = vadd.f32 %v734_v52, %v729_v24  ;;  %v860_v45 = vld [vmem:[#allocation4 + $0x1] sm:$0xff]  ;;  %v883_v24 = vstv %s1823_s8 }
 0x1bc   : > { %v756_v30 = vadd.f32 %v754_v10, %v749_v25  ;;  %v867_v62 = vld [vmem:[#allocation4 + $0x2] sm:$0xff]  ;;  %v863_v9 = vmul.f32 %v862_v55, %v860_v45  ;;  %v868_v52 = vld [vmem:[#allocation4 + $0xa] sm:$0xff] }
 0x1bd   : > { %v743_v32 = vadd.f32 %v741_v2, %v736_v28  ;;  %v874_v14 = vld [vmem:[#allocation4 + $0x3] sm:$0xff]  ;;  %v870_v23 = vmul.f32 %v869_v0, %v867_v62  ;;  %v875_v22 = vld [vmem:[#allocation4 + $0xb] sm:$0xff] }
 0x1be   : > { %v786_v39 = vadd.f32 %v784_v12, %v756_v30  ;;  %v861_v31 = vld [vmem:[#allocation4 + $0x9] sm:$0xff]  ;;  %v877_v25 = vmul.f32 %v876_v63, %v874_v14  ;;  %v878_v36 = vmul.f32 %v876_v63, %v875_v22 }
 0x1bf   : > { %v750_v27 = vadd.f32 %v748_v4, %v743_v32  ;;  %v881_v20 = vld [vmem:[#allocation4 + $0x4] sm:$0xff]  ;;  %v864_v28 = vmul.f32 %v862_v55, %v861_v31  ;;  %v871_v4 = vmul.f32 %v869_v0, %v868_v52 }
 0x1c0   : > { %v793_v40 = vadd.f32 %v791_v17, %v786_v39  ;;  %v888_v2 = vld [vmem:[#allocation4 + $0x5] sm:$0xff]  ;;  %v884_v12 = vmul.f32 %v883_v24, %v881_v20  ;;  %v897_v39 = vstv %s1833_s23 }
 0x1c1   : > { %v757_v41 = vadd.f32 %v755_v11, %v750_v27  ;;  %v895_v34 = vld [vmem:[#allocation4 + $0x6] sm:$0xff]  ;;  %v891_v15 = vmul.f32 %v890_v29, %v888_v2 }
 0x1c2   : > { %v800_v33 = vadd.f32 %v798_v50, %v793_v40  ;;  %v882_v17 = vld [vmem:[#allocation4 + $0xc] sm:$0xff] }
 0x1c3   : > { %v787_v53 = vadd.f32 %v785_v16, %v757_v41  ;;  %v889_v40 = vld [vmem:[#allocation4 + $0xd] sm:$0xff]  ;;  %v898_v41 = vmul.f32 %v897_v39, %v895_v34  ;;  %v885_v43 = vmul.f32 %v883_v24, %v882_v17 }
 0x1c4   : > { %v807_v46 = vadd.f32 %v805_v44, %v800_v33  ;;  %v896_v33 = vld [vmem:[#allocation4 + $0xe] sm:$0xff] }
 0x1c5   : > { %v794_v54 = vadd.f32 %v792_v18, %v787_v53  ;;  %v892_v18 = vmul.f32 %v890_v29, %v889_v40 }
 0x1c6   : > { %v814_v42 = vadd.f32 %v812_v47, %v807_v46  ;;  %v899_v47 = vmul.f32 %v897_v39, %v896_v33 }
 0x1c7   : > { %v801_v49 = vadd.f32 %v799_v6, %v794_v54 }
 0x1c8   : > { %v821_v56 = vadd.f32 %v819_v59, %v814_v42 }
 0x1c9   : > { %v808_v57 = vadd.f32 %v806_v51, %v801_v49 }
 0x1ca   : > { %v828_v58 = vadd.f32 %v826_v1, %v821_v56 }
 0x1cb   : > { %v815_v61 = vadd.f32 %v813_v8, %v808_v57 }
 0x1cc   : > { %v858_v21 = vadd.f32 %v856_v7, %v828_v58 }
 0x1cd   : > { %v822_v13 = vadd.f32 %v820_v60, %v815_v61 }
 0x1ce   : > { %v865_v19 = vadd.f32 %v863_v9, %v858_v21 }
 0x1cf   : > { %v829_v35 = vadd.f32 %v827_v5, %v822_v13 }
 0x1d0   : > { %v872_v26 = vadd.f32 %v870_v23, %v865_v19 }
 0x1d1   : > { %v859_v10 = vadd.f32 %v857_v3, %v829_v35 }
 0x1d2   : > { %v879_v30 = vadd.f32 %v877_v25, %v872_v26 }
 0x1d3   : > { %v866_v32 = vadd.f32 %v864_v28, %v859_v10 }
 0x1d4   : > { %v886_v27 = vadd.f32 %v884_v12, %v879_v30 }
 0x1d5   : > { %v873_v11 = vadd.f32 %v871_v4, %v866_v32 }
 0x1d6   : > { %v893_v50 = vadd.f32 %v891_v15, %v886_v27 }
 0x1d7   : > { %v880_v16 = vadd.f32 %v878_v36, %v873_v11 }
 0x1d8   : > { %v900_v44 = vadd.f32 %v898_v41, %v893_v50 }
 0x1d9   : > { %v887_v53 = vadd.f32 %v885_v43, %v880_v16 }
 0x1da   : > { %v1104_v37 = vmul.f32 -1.442695, %v900_v44 }
 0x1db   : > { %v894_v46 = vadd.f32 %v892_v18, %v887_v53 }
 0x1dc   : > { %1204 = vpow2.f32 %v1104_v37 }
 0x1dd   : > { %v901_v54 = vadd.f32 %v899_v47, %v894_v46 }
 0x1df   : > { %v1105_v6 = vmul.f32 -1.442695, %v901_v54 }
 0x1e1   : > { %1206 = vpow2.f32 %v1105_v6 }
 0x1e6   : > { %v1205_v48 = vpop.eup %1204 }
 0x1e7   : > { %v912_v42 = vadd.f32 1.0, %v1205_v48 }
 0x1e9   : > { %1208 = vrcp.f32 %v912_v42 }
 0x1eb   : > { %v1207_v59 = vpop.eup %1206 }
 0x1ec   : > { %v913_v49 = vadd.f32 1.0, %v1207_v59 }
 0x1ee   : > { %1210 = vrcp.f32 %v913_v49 }
 0x1f3   : > { %v1209_v51 = vpop.eup %1208 }
 0x1f4   : > { %918 = vst [vmem:[%s187_s29] sm:$0xff] %v1209_v51 }
 0x1f8   : > { %v1211_v38 = vpop.eup %1210 }
 0x1f9   : > { %919 = vst [vmem:[%s187_s29 + $0x8] sm:$0xff] %v1211_v38 }
 0x1fa   : > { %1268 = shalt.err (!%p1265_p11)
}
 0x1fb   : > { %s1269_s25 = scalar_lea.hbm %s1847_s17, 256  ;;  %s1273_s8 = scalar_lea.hbm %s1900_s2, 512 }
 0x1fc   : > { %p1270_p13 = scmp.ne.s32.totalorder %s1847_s17, %s1269_s25  ;;  %p1274_p6 = scmp.lt.u32.totalorder %s1847_s17, %s1900_s2 }
 0x1fd   : > { %p1275_p9 = scmp.lt.u32.totalorder %s1273_s8, %s1269_s25  ;;  %p1277_p4 = scmp.lt.u32.totalorder %s1269_s25, %s1847_s17 }
 0x1fe   : > { %p1271_p7 = pnand %p1270_p13, %p1917_p8 }
 0x1ff   : > { %p1276_p1 = por %p1275_p9, %p1274_p6 }
 0x200   : > { %p1272_p10 = pneg %p1271_p7 }
 0x201   : > { %p1278_p2 = por %p1277_p4, %p1276_p1 }
 0x203   : > { %p1279_p12 = pnand %p1278_p2, %p1272_p10 }
 0x205   : > { %1282 = shalt.err (!%p1279_p12)
}
 0x206   : > { %s1361_s27 = smov 128   ;;  %s1362_s28 = smov 8  }
 0x207   : > { %1119 = dma.vmem_to_hbm [thread:$0]  (%p1917_p8), %s1849_s5, 256, %s1847_s17, %s921_s19, %s1361_s27, %s1361_s27, %s1362_s28  }
 0x208 PF: > { %s949_s29 = sand.u32 1, %s1321_s9   ;;  %p1918_p0 = scmp.ne.s32.totalorder %s1908_s20, 0 }
 0x209   : > { %p1919_p3 = scmp.ge.s32.totalorder %s1341_s14, 2  ;;  %s950_s4 = scalar_lea.sflag [#allocation8], %s949_s29 }
 0x20b   : > { %p1130_p5 = pnand %p1919_p3, %p1918_p0 }
 0x20d   : > { %1316 = dma.done.wait (!%p1130_p5), %s950_s4, 256  }
 0x20e   : > { %1318 = vsyncadd (!%p1130_p5), %s950_s4, 4294967040  ;;  %s19_s14 = sadd.s32 1, %s1341_s14   ;;  %s1920_s9 = smov %s1325_s10 }
 0x20f   : > { %p16_p11 = scmp.ge.s32.totalorder %s19_s14, 4   ;;  %s1921_s10 = smov %s1329_s11 }
 0x210   : > { %s1922_s11 = smov %s1495_s26  ;;  %s1923_s12 = smov %s1337_s13 }
 0x211   : > { %s1924_s13 = smov %s1926_s22  ;;  %18 = sbr.rel (!%p16_p11) target bundleno = 7 (0x7), region = 90 }
 0x218   :  { %955 = vsyncpa [#allocation7], 1 }
 0x219   :  { %957 = vsyncpa [#allocation7 + $0x1], 1 }
 0x21a   :  { %958 = vsyncpa [#allocation8], 1 }
 0x21b   :  { %960 = vsyncpa [#allocation8 + $0x1], 1 }
 0x21c   :  { %961 = vsyncpa [#allocation9], 1 }
 0x21d   :  { %963 = vsyncpa [#allocation9 + $0x1], 1 }

</bundles_post_ra>
